<compile_context>
chip_gen: v5e
topology: v5e:2x2
jax: 0.10.0
libtpu: 0.0.40
codegen_flags: <defaults>
</compile_context>

<pallas_src>
import math
from functools import partial

import jax
import jax.numpy as jnp
from jax.experimental import pallas as pl
from jax.experimental.pallas import tpu as pltpu


# ----------------------------- tiling helper -----------------------------

def _pick_tile(dim, target, align):
    """Largest tile <= target that divides dim, preferring multiples of align.

    If dim <= target the full dimension is used (block == array extent, which
    always satisfies the TPU (8,128) block constraint)."""
    if dim <= target:
        return dim
    t = (target // align) * align
    while t >= align:
        if dim % t == 0:
            return t
        t -= align
    for t in range(min(target, dim), 0, -1):
        if dim % t == 0:
            return t
    return dim


# ----------------------------- Pallas kernels -----------------------------

def _make_matmul_kernel(has_bias, has_res, has_ln, relu, scale, eps):
    """Tiled matmul with f32 accumulator and a fused epilogue.

    Epilogue order (matches the reference module): +bias, *scale, ReLU,
    +residual, LayerNorm."""

    def kernel(*refs):
        refs = list(refs)
        x_ref = refs.pop(0)                              # [tm, tk] bf16
        w_ref = refs.pop(0)                              # [tk, tn] bf16
        b_ref = refs.pop(0) if has_bias else None        # [1, tn]  f32
        r_ref = refs.pop(0) if has_res else None         # [tm, tn] f32
        if has_ln:
            g_ref = refs.pop(0)                          # [1, tn]  f32
            beta_ref = refs.pop(0)                       # [1, tn]  f32
        o_ref = refs.pop(0)                              # [tm, tn]
        acc_ref = refs.pop(0)                            # [tm, tn] f32 scratch

        k = pl.program_id(2)

        @pl.when(k == 0)
        def _():
            acc_ref[...] = jnp.zeros_like(acc_ref)

        acc_ref[...] += jnp.dot(x_ref[...], w_ref[...],
                                preferred_element_type=jnp.float32)

        @pl.when(k == pl.num_programs(2) - 1)
        def _():
            y = acc_ref[...]
            if has_bias:
                y = y + b_ref[...]
            if scale is not None:
                y = y * scale
            if relu:
                y = jnp.maximum(y, 0.0)
            if has_res:
                y = y + r_ref[...]
            if has_ln:
                mu = jnp.mean(y, axis=-1, keepdims=True)
                var = jnp.mean((y - mu) ** 2, axis=-1, keepdims=True)
                y = (y - mu) * jax.lax.rsqrt(var + eps)
                y = y * g_ref[...] + beta_ref[...]
            o_ref[...] = y.astype(o_ref.dtype)

    return kernel


def _ln_kernel(x_ref, g_ref, b_ref, o_ref, *, eps):
    x = x_ref[...]
    mu = jnp.mean(x, axis=-1, keepdims=True)
    var = jnp.mean((x - mu) ** 2, axis=-1, keepdims=True)
    o_ref[...] = (x - mu) * jax.lax.rsqrt(var + eps) * g_ref[...] + b_ref[...]


def _attention_kernel(q_ref, k_ref, v_ref, m_ref, o_ref, *, inv_temp, causal):
    q = q_ref[0] * inv_temp                     # [H, Tq, dk] bf16 (scale folded)
    k = k_ref[0]                                # [H, Tk, dk] bf16
    v = v_ref[0]                                # [H, Tk, dv] bf16
    m = m_ref[0]                                # [1, Tk]     f32 pad mask

    s = jnp.einsum("hqd,hkd->hqk", q, k,
                   preferred_element_type=jnp.float32)         # [H, Tq, Tk]
    keep = (m > 0.0)[None, :, :]                                # [1, 1, Tk]
    if causal:
        Tq, Tk = s.shape[1], s.shape[2]
        row = jax.lax.broadcasted_iota(jnp.int32, (Tq, Tk), 0)
        col = jax.lax.broadcasted_iota(jnp.int32, (Tq, Tk), 1)
        keep = jnp.logical_and(keep, (col <= row)[None, :, :])
    s = jnp.where(keep, s, -1e9)                # masked_fill(mask==0, -1e9)
    s = s - jnp.max(s, axis=-1, keepdims=True)
    p = jnp.exp(s)
    p = p * pl.reciprocal(jnp.sum(p, axis=-1, keepdims=True), approx=True)
    o = jnp.einsum("hqk,hkd->hqd", p.astype(jnp.bfloat16), v,
                   preferred_element_type=jnp.float32)
    o_ref[0] = o.astype(o_ref.dtype)


# ----------------------------- kernel wrappers -----------------------------

def fused_matmul(x, wT, *, bias=None, residual=None, ln_params=None,
                 relu=False, scale=None, eps=1e-6, out_dtype=jnp.float32,
                 tm_target=256, tn_target=256, tk_target=512):
    """epilogue(x @ wT): x [M,K], wT [K,N] (pre-transposed weight)."""
    M, K = x.shape
    Kw, N = wT.shape
    assert K == Kw
    has_bias = bias is not None
    has_res = residual is not None
    has_ln = ln_params is not None

    tm = _pick_tile(M, tm_target, 8)
    tk = _pick_tile(K, tk_target, 128)
    tn = N if has_ln else _pick_tile(N, tn_target, 128)   # LN needs full rows

    grid = (M // tm, N // tn, K // tk)

    args = [x.astype(jnp.bfloat16), wT.astype(jnp.bfloat16)]
    in_specs = [
        pl.BlockSpec((tm, tk), lambda i, j, k: (i, k)),
        pl.BlockSpec((tk, tn), lambda i, j, k: (k, j)),
    ]
    if has_bias:
        args.append(bias.reshape(1, N).astype(jnp.float32))
        in_specs.append(pl.BlockSpec((1, tn), lambda i, j, k: (0, j)))
    if has_res:
        assert residual.shape == (M, N)
        args.append(residual.astype(jnp.float32))
        in_specs.append(pl.BlockSpec((tm, tn), lambda i, j, k: (i, j)))
    if has_ln:
        g, b = ln_params
        args.append(g.reshape(1, N).astype(jnp.float32))
        args.append(b.reshape(1, N).astype(jnp.float32))
        in_specs.append(pl.BlockSpec((1, tn), lambda i, j, k: (0, j)))
        in_specs.append(pl.BlockSpec((1, tn), lambda i, j, k: (0, j)))

    kernel = _make_matmul_kernel(has_bias, has_res, has_ln, relu, scale, eps)

    return pl.pallas_call(
        kernel,
        out_shape=jax.ShapeDtypeStruct((M, N), out_dtype),
        grid_spec=pltpu.PrefetchScalarGridSpec(
            num_scalar_prefetch=0,
            grid=grid,
            in_specs=in_specs,
            out_specs=pl.BlockSpec((tm, tn), lambda i, j, k: (i, j)),
            scratch_shapes=[pltpu.VMEM((tm, tn), jnp.float32)],
        ),
        compiler_params=pltpu.CompilerParams(
            dimension_semantics=("parallel", "parallel", "arbitrary"),
            vmem_limit_bytes=32 * 1024 * 1024,
        ),
    )(*args)


def layernorm(x, gamma, beta, eps=1e-6, tm_target=256):
    """Row-tiled LayerNorm(x) with affine params. x: [M, D] f32."""
    M, D = x.shape
    tm = _pick_tile(M, tm_target, 8)
    return pl.pallas_call(
        partial(_ln_kernel, eps=eps),
        out_shape=jax.ShapeDtypeStruct((M, D), jnp.float32),
        grid=(M // tm,),
        in_specs=[
            pl.BlockSpec((tm, D), lambda i: (i, 0)),
            pl.BlockSpec((1, D), lambda i: (0, 0)),
            pl.BlockSpec((1, D), lambda i: (0, 0)),
        ],
        out_specs=pl.BlockSpec((tm, D), lambda i: (i, 0)),
        compiler_params=pltpu.CompilerParams(dimension_semantics=("parallel",)),
    )(x.astype(jnp.float32), gamma.reshape(1, D), beta.reshape(1, D))


def scaled_dot_attention(q, k, v, pad_mask, inv_temp, causal):
    """q,k,v: [B,H,T,d] bf16; pad_mask: [B,1,Tk] f32 -> [B,H,Tq,dv] bf16."""
    B, H, Tq, dk = q.shape
    Tk = k.shape[2]
    dv = v.shape[3]
    return pl.pallas_call(
        partial(_attention_kernel, inv_temp=inv_temp, causal=causal),
        out_shape=jax.ShapeDtypeStruct((B, H, Tq, dv), jnp.bfloat16),
        grid=(B,),
        in_specs=[
            pl.BlockSpec((1, H, Tq, dk), lambda b: (b, 0, 0, 0)),
            pl.BlockSpec((1, H, Tk, dk), lambda b: (b, 0, 0, 0)),
            pl.BlockSpec((1, H, Tk, dv), lambda b: (b, 0, 0, 0)),
            pl.BlockSpec((1, 1, Tk), lambda b: (b, 0, 0)),
        ],
        out_specs=pl.BlockSpec((1, H, Tq, dv), lambda b: (b, 0, 0, 0)),
        compiler_params=pltpu.CompilerParams(dimension_semantics=("parallel",)),
    )(q.astype(jnp.bfloat16), k.astype(jnp.bfloat16), v.astype(jnp.bfloat16),
      pad_mask)


# ----------------------------- model pieces -----------------------------

def multi_head_attention(p, q_in, kv_in, pad_mask, cfg, *, self_attn, causal):
    """q_in: [B,Tq,D], kv_in: [B,Tk,D], pad_mask: [B,1,Tk] bool."""
    B, Tq, D = q_in.shape
    Tk = kv_in.shape[1]
    H, dk, dv = cfg["heads"], cfg["d_k"], cfg["d_v"]

    q_flat = q_in.reshape(B * Tq, D)             # residual, kept in f32

    if self_attn:
        # Fused Q/K/V projection: one wide, lane-dense matmul.
        qkv = fused_matmul(q_flat, p["w_qkv_T"], out_dtype=jnp.bfloat16)
        q = qkv[:, : H * dk]
        k = qkv[:, H * dk: 2 * H * dk]
        v = qkv[:, 2 * H * dk:]
    else:
        kv_flat = kv_in.reshape(B * Tk, D)
        q = fused_matmul(q_flat, p["w_q_T"], out_dtype=jnp.bfloat16)
        kv = fused_matmul(kv_flat, p["w_kv_T"], out_dtype=jnp.bfloat16)
        k = kv[:, : H * dk]
        v = kv[:, H * dk:]

    q = q.reshape(B, Tq, H, dk).transpose(0, 2, 1, 3)     # [B,H,Tq,dk]
    k = k.reshape(B, Tk, H, dk).transpose(0, 2, 1, 3)
    v = v.reshape(B, Tk, H, dv).transpose(0, 2, 1, 3)

    m = pad_mask.astype(jnp.float32)                       # [B,1,Tk]

    o = scaled_dot_attention(q, k, v, m, inv_temp=1.0 / math.sqrt(dk),
                             causal=causal)                # [B,H,Tq,dv] bf16
    o = o.transpose(0, 2, 1, 3).reshape(B * Tq, H * dv)

    # Output projection + residual add + LayerNorm, fused in one kernel.
    out = fused_matmul(o, p["fc_T"], residual=q_flat,
                       ln_params=(p["ln_g"], p["ln_b"]))
    return out.reshape(B, Tq, D)


def pos_ffn(p, x):
    B, T, D = x.shape
    x_flat = x.reshape(B * T, D)
    h = fused_matmul(x_flat, p["w1_T"], bias=p["w1_b"], relu=True,
                     out_dtype=jnp.bfloat16)
    out = fused_matmul(h, p["w2_T"], bias=p["w2_b"], residual=x_flat,
                       ln_params=(p["ln_g"], p["ln_b"]))
    return out.reshape(B, T, D)


def encoder(p, src_seq, src_mask, cfg):
    B, Ts = src_seq.shape
    D = cfg["d_model"]
    x = p["word_emb"][src_seq] + p["pos_table"][None, :Ts, :]
    # dropout -> identity (eval mode)
    x = layernorm(x.reshape(B * Ts, D), p["ln_g"], p["ln_b"]).reshape(B, Ts, D)
    for lp in p["layers"]:
        x = multi_head_attention(lp["slf"], x, x, src_mask, cfg,
                                 self_attn=True, causal=False)
        x = pos_ffn(lp["ffn"], x)
    return x


def decoder(p, trg_seq, trg_pad_mask, enc_out, src_mask, cfg):
    B, Tt = trg_seq.shape
    D = cfg["d_model"]
    x = p["word_emb"][trg_seq] + p["pos_table"][None, :Tt, :]
    x = layernorm(x.reshape(B * Tt, D), p["ln_g"], p["ln_b"]).reshape(B, Tt, D)
    for lp in p["layers"]:
        # causal (subsequent-token) mask is generated in-kernel.
        x = multi_head_attention(lp["slf"], x, x, trg_pad_mask, cfg,
                                 self_attn=True, causal=True)
        x = multi_head_attention(lp["crs"], x, enc_out, src_mask, cfg,
                                 self_attn=False, causal=False)
        x = pos_ffn(lp["ffn"], x)
    return x


def transformer_forward(params, src_seq, trg_seq, cfg):
    B, Ts = src_seq.shape
    Tt = trg_seq.shape[1]
    # get_pad_mask: (seq != pad).unsqueeze(-2) -> [B, 1, T]
    src_mask = (src_seq != cfg["src_pad"])[:, None, :]
    trg_pad_mask = (trg_seq != cfg["trg_pad"])[:, None, :]

    enc_out = encoder(params["encoder"], src_seq, src_mask, cfg)
    dec_out = decoder(params["decoder"], trg_seq, trg_pad_mask, enc_out,
                      src_mask, cfg)

    D = cfg["d_model"]
    # target_word_projection shares the decoder embedding weight; scale = D**-0.5
    logits = fused_matmul(dec_out.reshape(B * Tt, D), params["proj_wT"],
                          scale=cfg["x_logit_scale"])
    return logits                                            # [B*Tt, vocab]


# ----------------------------- parameters -----------------------------

def sinusoid_table(n_position, d_hid):
    pos = jnp.arange(n_position, dtype=jnp.float32)[:, None]
    i = jnp.arange(d_hid)[None, :]
    angle = pos / jnp.power(10000.0, (2 * (i // 2)).astype(jnp.float32) / d_hid)
    return jnp.where(i % 2 == 0, jnp.sin(angle), jnp.cos(angle)).astype(jnp.float32)


def init_params(key, cfg):
    D, d_inner = cfg["d_model"], cfg["d_inner"]
    H, dk, dv, L = cfg["heads"], cfg["d_k"], cfg["d_v"], cfg["layers"]
    vocab = cfg["vocab"]
    keys = iter(jax.random.split(key, 1024))
    wdt = jnp.bfloat16        # bf16 weight storage for the MXU matmuls

    def xav(shape):  # xavier_uniform_ on torch-shaped [out, in] matrices
        a = math.sqrt(6.0 / (shape[0] + shape[1]))
        return jax.random.uniform(next(keys), shape, jnp.float32, -a, a)

    def mha(cross):
        w_qs, w_ks, w_vs = xav((H * dk, D)), xav((H * dk, D)), xav((H * dv, D))
        fc = xav((D, H * dv))
        d = dict(fc_T=fc.T.astype(wdt),
                 ln_g=jnp.ones((D,), jnp.float32),
                 ln_b=jnp.zeros((D,), jnp.float32))
        if cross:
            d["w_q_T"] = w_qs.T.astype(wdt)
            d["w_kv_T"] = jnp.concatenate([w_ks, w_vs], axis=0).T.astype(wdt)
        else:
            d["w_qkv_T"] = jnp.concatenate([w_qs, w_ks, w_vs], axis=0).T.astype(wdt)
        return d

    def ffn():
        return dict(w1_T=xav((d_inner, D)).T.astype(wdt),
                    w1_b=jnp.zeros((d_inner,), jnp.float32),
                    w2_T=xav((D, d_inner)).T.astype(wdt),
                    w2_b=jnp.zeros((D,), jnp.float32),
                    ln_g=jnp.ones((D,), jnp.float32),
                    ln_b=jnp.zeros((D,), jnp.float32))

    # Shared embedding (encoder emb = decoder emb = projection weight).
    word_emb = xav((vocab, D))
    pos_table = sinusoid_table(cfg["num_pos"], D)

    enc = dict(word_emb=word_emb, pos_table=pos_table,
               ln_g=jnp.ones((D,), jnp.float32), ln_b=jnp.zeros((D,), jnp.float32),
               layers=[dict(slf=mha(False), ffn=ffn()) for _ in range(L)])
    dec = dict(word_emb=word_emb, pos_table=pos_table,
               ln_g=jnp.ones((D,), jnp.float32), ln_b=jnp.zeros((D,), jnp.float32),
               layers=[dict(slf=mha(False), crs=mha(True), ffn=ffn())
                       for _ in range(L)])
    return dict(encoder=enc, decoder=dec, proj_wT=word_emb.T.astype(wdt))


# ----------------------------- main -----------------------------

if __name__ == "__main__":
    cfg = dict(vocab=16, d_model=32, d_inner=64, heads=4, d_k=8, d_v=8,
               layers=2, num_pos=16, src_pad=0, trg_pad=0,
               x_logit_scale=32.0 ** -0.5)

    key = jax.random.PRNGKey(0)
    pkey, skey, tkey = jax.random.split(key, 3)
    params = init_params(pkey, cfg)

    B, Ts, Tt = 2, 8, 8
    src = jax.random.randint(skey, (B, Ts), 1, cfg["vocab"], dtype=jnp.int32)
    trg = jax.random.randint(tkey, (B, Tt), 1, cfg["vocab"], dtype=jnp.int32)
    # a few pad tokens to exercise the padding masks
    src = src.at[0, -2:].set(cfg["src_pad"])
    trg = trg.at[1, -1].set(cfg["trg_pad"])

    fwd = jax.jit(partial(transformer_forward, cfg=cfg))
    logits = fwd(params, src, trg)
    jax.block_until_ready(logits)

    assert logits.shape == (B * Tt, cfg["vocab"]), logits.shape
    assert bool(jnp.all(jnp.isfinite(logits)))
    # TODO(synk): dropout is treated as identity (eval mode); training-mode
    # stochastic dropout is not implemented.
    print("KERNEL_OK")
</pallas_src>

<mosaic_0001>
module attributes {stable_mosaic.version = 11 : i64} {
  func.func @_ln_kernel(%arg0: i32, %arg1: memref<16x32xf32, #tpu.memory_space<vmem>>, %arg2: memref<1x32xf32, #tpu.memory_space<vmem>>, %arg3: memref<1x32xf32, #tpu.memory_space<vmem>>, %arg4: memref<16x32xf32, #tpu.memory_space<vmem>>) attributes {dimension_semantics = [#tpu.dimension_semantics<parallel>], iteration_bounds = array<i64: 1>, scalar_prefetch = 0 : i64, scratch_operands = 0 : i64, tpu.core_type = #tpu.core_type<tc>, window_params = [{transform_indices = @transform_0, window_bounds = array<i64: 16, 32>}, {pipeline_mode = #tpu.pipeline_mode<synchronous>, transform_indices = @transform_1, window_bounds = array<i64: 1, 32>}, {pipeline_mode = #tpu.pipeline_mode<synchronous>, transform_indices = @transform_2, window_bounds = array<i64: 1, 32>}, {transform_indices = @transform_3, window_bounds = array<i64: 16, 32>}]} {
    %c0 = arith.constant 0 : index
    %c0_0 = arith.constant 0 : index
    %0 = vector.load %arg1[%c0, %c0_0] : memref<16x32xf32, #tpu.memory_space<vmem>>, vector<16x32xf32>
    %cst = arith.constant dense<0.000000e+00> : vector<16xf32>
    %1 = vector.multi_reduction <add>, %0, %cst [1] : vector<16x32xf32> to vector<16xf32>
    %2 = vector.shape_cast %1 : vector<16xf32> to vector<16x1xf32>
    %cst_1 = arith.constant 3.200000e+01 : f32
    %3 = vector.broadcast %cst_1 : f32 to vector<16x1xf32>
    %4 = arith.divf %2, %3 : vector<16x1xf32>
    %5 = vector.broadcast %4 : vector<16x1xf32> to vector<16x32xf32>
    %6 = arith.subf %0, %5 : vector<16x32xf32>
    %7 = arith.mulf %6, %6 : vector<16x32xf32>
    %cst_2 = arith.constant dense<0.000000e+00> : vector<16xf32>
    %8 = vector.multi_reduction <add>, %7, %cst_2 [1] : vector<16x32xf32> to vector<16xf32>
    %9 = vector.shape_cast %8 : vector<16xf32> to vector<16x1xf32>
    %cst_3 = arith.constant 3.200000e+01 : f32
    %10 = vector.broadcast %cst_3 : f32 to vector<16x1xf32>
    %11 = arith.divf %9, %10 : vector<16x1xf32>
    %12 = vector.broadcast %4 : vector<16x1xf32> to vector<16x32xf32>
    %13 = arith.subf %0, %12 : vector<16x32xf32>
    %cst_4 = arith.constant 9.99999997E-7 : f32
    %14 = vector.broadcast %cst_4 : f32 to vector<16x1xf32>
    %15 = arith.addf %11, %14 : vector<16x1xf32>
    %16 = math.rsqrt %15 : vector<16x1xf32>
    %17 = vector.broadcast %16 : vector<16x1xf32> to vector<16x32xf32>
    %18 = arith.mulf %13, %17 : vector<16x32xf32>
    %c0_5 = arith.constant 0 : index
    %c0_6 = arith.constant 0 : index
    %19 = vector.load %arg2[%c0_5, %c0_6] : memref<1x32xf32, #tpu.memory_space<vmem>>, vector<1x32xf32>
    %20 = vector.broadcast %19 : vector<1x32xf32> to vector<16x32xf32>
    %21 = arith.mulf %18, %20 : vector<16x32xf32>
    %c0_7 = arith.constant 0 : index
    %c0_8 = arith.constant 0 : index
    %22 = vector.load %arg3[%c0_7, %c0_8] : memref<1x32xf32, #tpu.memory_space<vmem>>, vector<1x32xf32>
    %23 = vector.broadcast %22 : vector<1x32xf32> to vector<16x32xf32>
    %24 = arith.addf %21, %23 : vector<16x32xf32>
    %c0_9 = arith.constant 0 : index
    %c0_10 = arith.constant 0 : index
    %25 = vector.load %arg4[%c0_9, %c0_10] : memref<16x32xf32, #tpu.memory_space<vmem>>, vector<16x32xf32>
    tpu.vector_store %arg4[%c0_9, %c0_10], %24 {strides = array<i32>} : memref<16x32xf32, #tpu.memory_space<vmem>>, vector<16x32xf32>,
    return
  }
  func.func @transform_0(%arg0: i32) -> (i32, i32) {
    %c0_i32 = arith.constant 0 : i32
    %c0_i32_0 = arith.constant 0 : i32
    return %arg0, %c0_i32 : i32, i32
  }
  func.func @transform_1(%arg0: i32) -> (i32, i32) {
    %c0_i32 = arith.constant 0 : i32
    %c0_i32_0 = arith.constant 0 : i32
    %c0_i32_1 = arith.constant 0 : i32
    return %c0_i32, %c0_i32_0 : i32, i32
  }
  func.func @transform_2(%arg0: i32) -> (i32, i32) {
    %c0_i32 = arith.constant 0 : i32
    %c0_i32_0 = arith.constant 0 : i32
    %c0_i32_1 = arith.constant 0 : i32
    return %c0_i32, %c0_i32_0 : i32, i32
  }
  func.func @transform_3(%arg0: i32) -> (i32, i32) {
    %c0_i32 = arith.constant 0 : i32
    %c0_i32_0 = arith.constant 0 : i32
    return %arg0, %c0_i32 : i32, i32
  }
}

module attributes {stable_mosaic.version = 11 : i64} {
  func.func @kernel(%arg0: i32, %arg1: i32, %arg2: i32, %arg3: memref<16x32xbf16, #tpu.memory_space<vmem>>, %arg4: memref<32x96xbf16, #tpu.memory_space<vmem>>, %arg5: memref<16x96xbf16, #tpu.memory_space<vmem>>, %arg6: memref<16x96xf32, #tpu.memory_space<vmem>>) attributes {dimension_semantics = [#tpu.dimension_semantics<parallel>, #tpu.dimension_semantics<parallel>, #tpu.dimension_semantics<arbitrary>], iteration_bounds = array<i64: 1, 1, 1>, scalar_prefetch = 0 : i64, scratch_operands = 1 : i64, tpu.core_type = #tpu.core_type<tc>, window_params = [{transform_indices = @transform_0, window_bounds = array<i64: 16, 32>}, {transform_indices = @transform_1, window_bounds = array<i64: 32, 96>}, {transform_indices = @transform_2, window_bounds = array<i64: 16, 96>}]} {
    %c0_i32 = arith.constant 0 : i32
    %0 = arith.cmpi eq, %arg2, %c0_i32 : i32
    %1 = arith.extui %0 : i1 to i32
    %c0_i32_0 = arith.constant 0 : i32
    %2 = arith.cmpi ne, %1, %c0_i32_0 : i32
    scf.if %2 {
      %cst_10 = arith.constant 0.000000e+00 : f32
      %12 = vector.broadcast %cst_10 : f32 to vector<16x96xf32>
      %c0_11 = arith.constant 0 : index
      %c0_12 = arith.constant 0 : index
      %13 = vector.load %arg6[%c0_11, %c0_12] : memref<16x96xf32, #tpu.memory_space<vmem>>, vector<16x96xf32>
      tpu.vector_store %arg6[%c0_11, %c0_12], %12 {strides = array<i32>} : memref<16x96xf32, #tpu.memory_space<vmem>>, vector<16x96xf32>,
    } else {
    }
    %c0 = arith.constant 0 : index
    %c0_1 = arith.constant 0 : index
    %3 = vector.load %arg6[%c0, %c0_1] : memref<16x96xf32, #tpu.memory_space<vmem>>, vector<16x96xf32>
    %c0_2 = arith.constant 0 : index
    %c0_3 = arith.constant 0 : index
    %4 = vector.load %arg3[%c0_2, %c0_3] : memref<16x32xbf16, #tpu.memory_space<vmem>>, vector<16x32xbf16>
    %c0_4 = arith.constant 0 : index
    %c0_5 = arith.constant 0 : index
    %5 = vector.load %arg4[%c0_4, %c0_5] : memref<32x96xbf16, #tpu.memory_space<vmem>>, vector<32x96xbf16>
    %cst = arith.constant dense<0.000000e+00> : vector<16x96xf32>
    %6 = tpu.matmul %4, %5, %cst {dimension_numbers = #tpu.dot_dimension_numbers<[1], [0], [0], [1], [0, 0, 1, 1], [], []>} : vector<16x32xbf16>, vector<32x96xbf16>, vector<16x96xf32> -> vector<16x96xf32>
    %7 = arith.addf %3, %6 : vector<16x96xf32>
    %c0_6 = arith.constant 0 : index
    %c0_7 = arith.constant 0 : index
    %8 = vector.load %arg6[%c0_6, %c0_7] : memref<16x96xf32, #tpu.memory_space<vmem>>, vector<16x96xf32>
    tpu.vector_store %arg6[%c0_6, %c0_7], %7 {strides = array<i32>} : memref<16x96xf32, #tpu.memory_space<vmem>>, vector<16x96xf32>,
    %c0_i32_8 = arith.constant 0 : i32
    %9 = arith.cmpi eq, %arg2, %c0_i32_8 : i32
    %10 = arith.extui %9 : i1 to i32
    %c0_i32_9 = arith.constant 0 : i32
    %11 = arith.cmpi ne, %10, %c0_i32_9 : i32
    scf.if %11 {
      %c0_10 = arith.constant 0 : index
      %c0_11 = arith.constant 0 : index
      %12 = vector.load %arg6[%c0_10, %c0_11] : memref<16x96xf32, #tpu.memory_space<vmem>>, vector<16x96xf32>
      %13 = arith.truncf %12 : vector<16x96xf32> to vector<16x96xbf16>
      %c0_12 = arith.constant 0 : index
      %c0_13 = arith.constant 0 : index
      %14 = vector.load %arg5[%c0_12, %c0_13] : memref<16x96xbf16, #tpu.memory_space<vmem>>, vector<16x96xbf16>
      tpu.vector_store %arg5[%c0_12, %c0_13], %13 {strides = array<i32>} : memref<16x96xbf16, #tpu.memory_space<vmem>>, vector<16x96xbf16>,
    } else {
    }
    return
  }
  func.func @transform_0(%arg0: i32, %arg1: i32, %arg2: i32) -> (i32, i32) {
    %c0_i32 = arith.constant 0 : i32
    return %arg0, %arg2 : i32, i32
  }
  func.func @transform_1(%arg0: i32, %arg1: i32, %arg2: i32) -> (i32, i32) {
    %c0_i32 = arith.constant 0 : i32
    return %arg2, %arg1 : i32, i32
  }
  func.func @transform_2(%arg0: i32, %arg1: i32, %arg2: i32) -> (i32, i32) {
    %c0_i32 = arith.constant 0 : i32
    return %arg0, %arg1 : i32, i32
  }
}

module attributes {stable_mosaic.version = 11 : i64} {
  func.func @_attention_kernel(%arg0: i32, %arg1: memref<1x4x8x8xbf16, #tpu.memory_space<vmem>>, %arg2: memref<1x4x8x8xbf16, #tpu.memory_space<vmem>>, %arg3: memref<1x4x8x8xbf16, #tpu.memory_space<vmem>>, %arg4: memref<1x1x8xf32, #tpu.memory_space<vmem>>, %arg5: memref<1x4x8x8xbf16, #tpu.memory_space<vmem>>) attributes {dimension_semantics = [#tpu.dimension_semantics<parallel>], iteration_bounds = array<i64: 2>, scalar_prefetch = 0 : i64, scratch_operands = 0 : i64, tpu.core_type = #tpu.core_type<tc>, window_params = [{transform_indices = @transform_0, window_bounds = array<i64: 1, 4, 8, 8>}, {transform_indices = @transform_1, window_bounds = array<i64: 1, 4, 8, 8>}, {transform_indices = @transform_2, window_bounds = array<i64: 1, 4, 8, 8>}, {transform_indices = @transform_3, window_bounds = array<i64: 1, 1, 8>}, {transform_indices = @transform_4, window_bounds = array<i64: 1, 4, 8, 8>}]} {
    %c0 = arith.constant 0 : index
    %c0_0 = arith.constant 0 : index
    %c0_1 = arith.constant 0 : index
    %c0_2 = arith.constant 0 : index
    %0 = vector.load %arg1[%c0, %c0_0, %c0_1, %c0_2] : memref<1x4x8x8xbf16, #tpu.memory_space<vmem>>, vector<1x4x8x8xbf16>
    %1 = vector.shape_cast %0 : vector<1x4x8x8xbf16> to vector<4x8x8xbf16>
    %cst = arith.constant 3.535160e-01 : bf16
    %2 = vector.broadcast %cst : bf16 to vector<4x8x8xbf16>
    %3 = arith.mulf %1, %2 : vector<4x8x8xbf16>
    %c0_3 = arith.constant 0 : index
    %c0_4 = arith.constant 0 : index
    %c0_5 = arith.constant 0 : index
    %c0_6 = arith.constant 0 : index
    %4 = vector.load %arg2[%c0_3, %c0_4, %c0_5, %c0_6] : memref<1x4x8x8xbf16, #tpu.memory_space<vmem>>, vector<1x4x8x8xbf16>
    %5 = vector.shape_cast %4 : vector<1x4x8x8xbf16> to vector<4x8x8xbf16>
    %c0_7 = arith.constant 0 : index
    %c0_8 = arith.constant 0 : index
    %c0_9 = arith.constant 0 : index
    %c0_10 = arith.constant 0 : index
    %6 = vector.load %arg3[%c0_7, %c0_8, %c0_9, %c0_10] : memref<1x4x8x8xbf16, #tpu.memory_space<vmem>>, vector<1x4x8x8xbf16>
    %7 = vector.shape_cast %6 : vector<1x4x8x8xbf16> to vector<4x8x8xbf16>
    %c0_11 = arith.constant 0 : index
    %c0_12 = arith.constant 0 : index
    %c0_13 = arith.constant 0 : index
    %8 = vector.load %arg4[%c0_11, %c0_12, %c0_13] : memref<1x1x8xf32, #tpu.memory_space<vmem>>, vector<1x1x8xf32>
    %9 = vector.shape_cast %8 : vector<1x1x8xf32> to vector<1x8xf32>
    "tpu.trace_start"() <{level = 10 : i32, message = "hqd,hkd->hqk"}> : () -> ()
    %cst_14 = arith.constant dense<0.000000e+00> : vector<4x8x8xf32>
    %10 = tpu.matmul %3, %5, %cst_14 {dimension_numbers = #tpu.dot_dimension_numbers<[2], [2], [1], [1], [0, 0, 0, 1, 1, 1], [0], [0]>} : vector<4x8x8xbf16>, vector<4x8x8xbf16>, vector<4x8x8xf32> -> vector<4x8x8xf32>
    %cst_15 = arith.constant 0.000000e+00 : f32
    "tpu.trace_stop"() : () -> ()
    %11 = vector.broadcast %cst_15 : f32 to vector<1x8xf32>
    %12 = arith.cmpf ogt, %9, %11 : vector<1x8xf32>
    %13 = vector.shape_cast %12 : vector<1x8xi1> to vector<1x1x8xi1>
    %14 = tpu.iota {dimensions = array<i32: 0>} : vector<8x8xi32>
    %15 = tpu.iota {dimensions = array<i32: 1>} : vector<8x8xi32>
    %16 = arith.cmpi sle, %15, %14 : vector<8x8xi32>
    %17 = vector.shape_cast %16 : vector<8x8xi1> to vector<1x8x8xi1>
    %18 = vector.broadcast %13 : vector<1x1x8xi1> to vector<1x8x8xi1>
    %19 = arith.andi %18, %17 : vector<1x8x8xi1>
    %cst_16 = arith.constant -1.000000e+09 : f32
    %20 = vector.shape_cast %19 : vector<1x8x8xi1> to vector<1x8x8xi1>
    %21 = vector.broadcast %20 : vector<1x8x8xi1> to vector<4x8x8xi1>
    %22 = vector.broadcast %cst_16 : f32 to vector<4x8x8xf32>
    %23 = arith.select %21, %10, %22 : vector<4x8x8xi1>, vector<4x8x8xf32>
    %cst_17 = arith.constant dense<0xFF800000> : vector<4x8xf32>
    %24 = vector.multi_reduction <maximumf>, %23, %cst_17 [2] : vector<4x8x8xf32> to vector<4x8xf32>
    %25 = vector.shape_cast %24 : vector<4x8xf32> to vector<4x8x1xf32>
    %26 = vector.broadcast %25 : vector<4x8x1xf32> to vector<4x8x8xf32>
    %27 = arith.subf %23, %26 : vector<4x8x8xf32>
    %28 = math.exp %27 : vector<4x8x8xf32>
    %cst_18 = arith.constant dense<0.000000e+00> : vector<4x8xf32>
    %29 = vector.multi_reduction <add>, %28, %cst_18 [2] : vector<4x8x8xf32> to vector<4x8xf32>
    %30 = vector.shape_cast %29 : vector<4x8xf32> to vector<4x8x1xf32>
    %31 = tpu.reciprocal %30 {approx = true} : vector<4x8x1xf32> -> vector<4x8x1xf32>
    %32 = vector.broadcast %31 : vector<4x8x1xf32> to vector<4x8x8xf32>
    %33 = arith.mulf %28, %32 : vector<4x8x8xf32>
    %34 = arith.truncf %33 : vector<4x8x8xf32> to vector<4x8x8xbf16>
    "tpu.trace_start"() <{level = 10 : i32, message = "hqk,hkd->hqd"}> : () -> ()
    %cst_19 = arith.constant dense<0.000000e+00> : vector<4x8x8xf32>
    %35 = tpu.matmul %34, %7, %cst_19 {dimension_numbers = #tpu.dot_dimension_numbers<[2], [1], [1], [2], [0, 0, 0, 1, 1, 2], [0], [0]>} : vector<4x8x8xbf16>, vector<4x8x8xbf16>, vector<4x8x8xf32> -> vector<4x8x8xf32>
    "tpu.trace_stop"() : () -> ()
    %36 = arith.truncf %35 : vector<4x8x8xf32> to vector<4x8x8xbf16>
    %c0_20 = arith.constant 0 : index
    %c0_21 = arith.constant 0 : index
    %c0_22 = arith.constant 0 : index
    %c0_23 = arith.constant 0 : index
    %37 = vector.load %arg5[%c0_20, %c0_21, %c0_22, %c0_23] : memref<1x4x8x8xbf16, #tpu.memory_space<vmem>>, vector<1x4x8x8xbf16>
    %38 = vector.shape_cast %37 : vector<1x4x8x8xbf16> to vector<4x8x8xbf16>
    %39 = vector.shape_cast %36 : vector<4x8x8xbf16> to vector<1x4x8x8xbf16>
    tpu.vector_store %arg5[%c0_20, %c0_21, %c0_22, %c0_23], %39 {strides = array<i32>} : memref<1x4x8x8xbf16, #tpu.memory_space<vmem>>, vector<1x4x8x8xbf16>,
    return
  }
  func.func @transform_0(%arg0: i32) -> (i32, i32, i32, i32) {
    %c0_i32 = arith.constant 0 : i32
    %c0_i32_0 = arith.constant 0 : i32
    %c0_i32_1 = arith.constant 0 : i32
    %c0_i32_2 = arith.constant 0 : i32
    return %arg0, %c0_i32, %c0_i32_0, %c0_i32_1 : i32, i32, i32, i32
  }
  func.func @transform_1(%arg0: i32) -> (i32, i32, i32, i32) {
    %c0_i32 = arith.constant 0 : i32
    %c0_i32_0 = arith.constant 0 : i32
    %c0_i32_1 = arith.constant 0 : i32
    %c0_i32_2 = arith.constant 0 : i32
    return %arg0, %c0_i32, %c0_i32_0, %c0_i32_1 : i32, i32, i32, i32
  }
  func.func @transform_2(%arg0: i32) -> (i32, i32, i32, i32) {
    %c0_i32 = arith.constant 0 : i32
    %c0_i32_0 = arith.constant 0 : i32
    %c0_i32_1 = arith.constant 0 : i32
    %c0_i32_2 = arith.constant 0 : i32
    return %arg0, %c0_i32, %c0_i32_0, %c0_i32_1 : i32, i32, i32, i32
  }
  func.func @transform_3(%arg0: i32) -> (i32, i32, i32) {
    %c0_i32 = arith.constant 0 : i32
    %c0_i32_0 = arith.constant 0 : i32
    %c0_i32_1 = arith.constant 0 : i32
    return %arg0, %c0_i32, %c0_i32_0 : i32, i32, i32
  }
  func.func @transform_4(%arg0: i32) -> (i32, i32, i32, i32) {
    %c0_i32 = arith.constant 0 : i32
    %c0_i32_0 = arith.constant 0 : i32
    %c0_i32_1 = arith.constant 0 : i32
    %c0_i32_2 = arith.constant 0 : i32
    return %arg0, %c0_i32, %c0_i32_0, %c0_i32_1 : i32, i32, i32, i32
  }
}

module attributes {stable_mosaic.version = 11 : i64} {
  func.func @kernel(%arg0: i32, %arg1: i32, %arg2: i32, %arg3: memref<16x32xbf16, #tpu.memory_space<vmem>>, %arg4: memref<32x32xbf16, #tpu.memory_space<vmem>>, %arg5: memref<16x32xf32, #tpu.memory_space<vmem>>, %arg6: memref<1x32xf32, #tpu.memory_space<vmem>>, %arg7: memref<1x32xf32, #tpu.memory_space<vmem>>, %arg8: memref<16x32xf32, #tpu.memory_space<vmem>>, %arg9: memref<16x32xf32, #tpu.memory_space<vmem>>) attributes {dimension_semantics = [#tpu.dimension_semantics<parallel>, #tpu.dimension_semantics<parallel>, #tpu.dimension_semantics<arbitrary>], iteration_bounds = array<i64: 1, 1, 1>, scalar_prefetch = 0 : i64, scratch_operands = 1 : i64, tpu.core_type = #tpu.core_type<tc>, window_params = [{transform_indices = @transform_0, window_bounds = array<i64: 16, 32>}, {transform_indices = @transform_1, window_bounds = array<i64: 32, 32>}, {transform_indices = @transform_2, window_bounds = array<i64: 16, 32>}, {transform_indices = @transform_3, window_bounds = array<i64: 1, 32>}, {transform_indices = @transform_4, window_bounds = array<i64: 1, 32>}, {transform_indices = @transform_5, window_bounds = array<i64: 16, 32>}]} {
    %c0_i32 = arith.constant 0 : i32
    %0 = arith.cmpi eq, %arg2, %c0_i32 : i32
    %1 = arith.extui %0 : i1 to i32
    %c0_i32_0 = arith.constant 0 : i32
    %2 = arith.cmpi ne, %1, %c0_i32_0 : i32
    scf.if %2 {
      %cst_10 = arith.constant 0.000000e+00 : f32
      %12 = vector.broadcast %cst_10 : f32 to vector<16x32xf32>
      %c0_11 = arith.constant 0 : index
      %c0_12 = arith.constant 0 : index
      %13 = vector.load %arg9[%c0_11, %c0_12] : memref<16x32xf32, #tpu.memory_space<vmem>>, vector<16x32xf32>
      tpu.vector_store %arg9[%c0_11, %c0_12], %12 {strides = array<i32>} : memref<16x32xf32, #tpu.memory_space<vmem>>, vector<16x32xf32>,
    } else {
    }
    %c0 = arith.constant 0 : index
    %c0_1 = arith.constant 0 : index
    %3 = vector.load %arg9[%c0, %c0_1] : memref<16x32xf32, #tpu.memory_space<vmem>>, vector<16x32xf32>
    %c0_2 = arith.constant 0 : index
    %c0_3 = arith.constant 0 : index
    %4 = vector.load %arg3[%c0_2, %c0_3] : memref<16x32xbf16, #tpu.memory_space<vmem>>, vector<16x32xbf16>
    %c0_4 = arith.constant 0 : index
    %c0_5 = arith.constant 0 : index
    %5 = vector.load %arg4[%c0_4, %c0_5] : memref<32x32xbf16, #tpu.memory_space<vmem>>, vector<32x32xbf16>
    %cst = arith.constant dense<0.000000e+00> : vector<16x32xf32>
    %6 = tpu.matmul %4, %5, %cst {dimension_numbers = #tpu.dot_dimension_numbers<[1], [0], [0], [1], [0, 0, 1, 1], [], []>} : vector<16x32xbf16>, vector<32x32xbf16>, vector<16x32xf32> -> vector<16x32xf32>
    %7 = arith.addf %3, %6 : vector<16x32xf32>
    %c0_6 = arith.constant 0 : index
    %c0_7 = arith.constant 0 : index
    %8 = vector.load %arg9[%c0_6, %c0_7] : memref<16x32xf32, #tpu.memory_space<vmem>>, vector<16x32xf32>
    tpu.vector_store %arg9[%c0_6, %c0_7], %7 {strides = array<i32>} : memref<16x32xf32, #tpu.memory_space<vmem>>, vector<16x32xf32>,
    %c0_i32_8 = arith.constant 0 : i32
    %9 = arith.cmpi eq, %arg2, %c0_i32_8 : i32
    %10 = arith.extui %9 : i1 to i32
    %c0_i32_9 = arith.constant 0 : i32
    %11 = arith.cmpi ne, %10, %c0_i32_9 : i32
    scf.if %11 {
      %c0_10 = arith.constant 0 : index
      %c0_11 = arith.constant 0 : index
      %12 = vector.load %arg9[%c0_10, %c0_11] : memref<16x32xf32, #tpu.memory_space<vmem>>, vector<16x32xf32>
      %c0_12 = arith.constant 0 : index
      %c0_13 = arith.constant 0 : index
      %13 = vector.load %arg5[%c0_12, %c0_13] : memref<16x32xf32, #tpu.memory_space<vmem>>, vector<16x32xf32>
      %14 = arith.addf %12, %13 : vector<16x32xf32>
      %cst_14 = arith.constant dense<0.000000e+00> : vector<16xf32>
      %15 = vector.multi_reduction <add>, %14, %cst_14 [1] : vector<16x32xf32> to vector<16xf32>
      %16 = vector.shape_cast %15 : vector<16xf32> to vector<16x1xf32>
      %cst_15 = arith.constant 3.200000e+01 : f32
      %17 = vector.broadcast %cst_15 : f32 to vector<16x1xf32>
      %18 = arith.divf %16, %17 : vector<16x1xf32>
      %19 = vector.broadcast %18 : vector<16x1xf32> to vector<16x32xf32>
      %20 = arith.subf %14, %19 : vector<16x32xf32>
      %21 = arith.mulf %20, %20 : vector<16x32xf32>
      %cst_16 = arith.constant dense<0.000000e+00> : vector<16xf32>
      %22 = vector.multi_reduction <add>, %21, %cst_16 [1] : vector<16x32xf32> to vector<16xf32>
      %23 = vector.shape_cast %22 : vector<16xf32> to vector<16x1xf32>
      %cst_17 = arith.constant 3.200000e+01 : f32
      %24 = vector.broadcast %cst_17 : f32 to vector<16x1xf32>
      %25 = arith.divf %23, %24 : vector<16x1xf32>
      %26 = vector.broadcast %18 : vector<16x1xf32> to vector<16x32xf32>
      %27 = arith.subf %14, %26 : vector<16x32xf32>
      %cst_18 = arith.constant 9.99999997E-7 : f32
      %28 = vector.broadcast %cst_18 : f32 to vector<16x1xf32>
      %29 = arith.addf %25, %28 : vector<16x1xf32>
      %30 = math.rsqrt %29 : vector<16x1xf32>
      %31 = vector.broadcast %30 : vector<16x1xf32> to vector<16x32xf32>
      %32 = arith.mulf %27, %31 : vector<16x32xf32>
      %c0_19 = arith.constant 0 : index
      %c0_20 = arith.constant 0 : index
      %33 = vector.load %arg6[%c0_19, %c0_20] : memref<1x32xf32, #tpu.memory_space<vmem>>, vector<1x32xf32>
      %34 = vector.broadcast %33 : vector<1x32xf32> to vector<16x32xf32>
      %35 = arith.mulf %32, %34 : vector<16x32xf32>
      %c0_21 = arith.constant 0 : index
      %c0_22 = arith.constant 0 : index
      %36 = vector.load %arg7[%c0_21, %c0_22] : memref<1x32xf32, #tpu.memory_space<vmem>>, vector<1x32xf32>
      %37 = vector.broadcast %36 : vector<1x32xf32> to vector<16x32xf32>
      %38 = arith.addf %35, %37 : vector<16x32xf32>
      %c0_23 = arith.constant 0 : index
      %c0_24 = arith.constant 0 : index
      %39 = vector.load %arg8[%c0_23, %c0_24] : memref<16x32xf32, #tpu.memory_space<vmem>>, vector<16x32xf32>
      tpu.vector_store %arg8[%c0_23, %c0_24], %38 {strides = array<i32>} : memref<16x32xf32, #tpu.memory_space<vmem>>, vector<16x32xf32>,
    } else {
    }
    return
  }
  func.func @transform_0(%arg0: i32, %arg1: i32, %arg2: i32) -> (i32, i32) {
    %c0_i32 = arith.constant 0 : i32
    return %arg0, %arg2 : i32, i32
  }
  func.func @transform_1(%arg0: i32, %arg1: i32, %arg2: i32) -> (i32, i32) {
    %c0_i32 = arith.constant 0 : i32
    return %arg2, %arg1 : i32, i32
  }
  func.func @transform_2(%arg0: i32, %arg1: i32, %arg2: i32) -> (i32, i32) {
    %c0_i32 = arith.constant 0 : i32
    return %arg0, %arg1 : i32, i32
  }
  func.func @transform_3(%arg0: i32, %arg1: i32, %arg2: i32) -> (i32, i32) {
    %c0_i32 = arith.constant 0 : i32
    %c0_i32_0 = arith.constant 0 : i32
    return %c0_i32, %arg1 : i32, i32
  }
  func.func @transform_4(%arg0: i32, %arg1: i32, %arg2: i32) -> (i32, i32) {
    %c0_i32 = arith.constant 0 : i32
    %c0_i32_0 = arith.constant 0 : i32
    return %c0_i32, %arg1 : i32, i32
  }
  func.func @transform_5(%arg0: i32, %arg1: i32, %arg2: i32) -> (i32, i32) {
    %c0_i32 = arith.constant 0 : i32
    return %arg0, %arg1 : i32, i32
  }
}

module attributes {stable_mosaic.version = 11 : i64} {
  func.func @kernel(%arg0: i32, %arg1: i32, %arg2: i32, %arg3: memref<16x32xbf16, #tpu.memory_space<vmem>>, %arg4: memref<32x32xbf16, #tpu.memory_space<vmem>>, %arg5: memref<16x32xbf16, #tpu.memory_space<vmem>>, %arg6: memref<16x32xf32, #tpu.memory_space<vmem>>) attributes {dimension_semantics = [#tpu.dimension_semantics<parallel>, #tpu.dimension_semantics<parallel>, #tpu.dimension_semantics<arbitrary>], iteration_bounds = array<i64: 1, 1, 1>, scalar_prefetch = 0 : i64, scratch_operands = 1 : i64, tpu.core_type = #tpu.core_type<tc>, window_params = [{transform_indices = @transform_0, window_bounds = array<i64: 16, 32>}, {transform_indices = @transform_1, window_bounds = array<i64: 32, 32>}, {transform_indices = @transform_2, window_bounds = array<i64: 16, 32>}]} {
    %c0_i32 = arith.constant 0 : i32
    %0 = arith.cmpi eq, %arg2, %c0_i32 : i32
    %1 = arith.extui %0 : i1 to i32
    %c0_i32_0 = arith.constant 0 : i32
    %2 = arith.cmpi ne, %1, %c0_i32_0 : i32
    scf.if %2 {
      %cst_10 = arith.constant 0.000000e+00 : f32
      %12 = vector.broadcast %cst_10 : f32 to vector<16x32xf32>
      %c0_11 = arith.constant 0 : index
      %c0_12 = arith.constant 0 : index
      %13 = vector.load %arg6[%c0_11, %c0_12] : memref<16x32xf32, #tpu.memory_space<vmem>>, vector<16x32xf32>
      tpu.vector_store %arg6[%c0_11, %c0_12], %12 {strides = array<i32>} : memref<16x32xf32, #tpu.memory_space<vmem>>, vector<16x32xf32>,
    } else {
    }
    %c0 = arith.constant 0 : index
    %c0_1 = arith.constant 0 : index
    %3 = vector.load %arg6[%c0, %c0_1] : memref<16x32xf32, #tpu.memory_space<vmem>>, vector<16x32xf32>
    %c0_2 = arith.constant 0 : index
    %c0_3 = arith.constant 0 : index
    %4 = vector.load %arg3[%c0_2, %c0_3] : memref<16x32xbf16, #tpu.memory_space<vmem>>, vector<16x32xbf16>
    %c0_4 = arith.constant 0 : index
    %c0_5 = arith.constant 0 : index
    %5 = vector.load %arg4[%c0_4, %c0_5] : memref<32x32xbf16, #tpu.memory_space<vmem>>, vector<32x32xbf16>
    %cst = arith.constant dense<0.000000e+00> : vector<16x32xf32>
    %6 = tpu.matmul %4, %5, %cst {dimension_numbers = #tpu.dot_dimension_numbers<[1], [0], [0], [1], [0, 0, 1, 1], [], []>} : vector<16x32xbf16>, vector<32x32xbf16>, vector<16x32xf32> -> vector<16x32xf32>
    %7 = arith.addf %3, %6 : vector<16x32xf32>
    %c0_6 = arith.constant 0 : index
    %c0_7 = arith.constant 0 : index
    %8 = vector.load %arg6[%c0_6, %c0_7] : memref<16x32xf32, #tpu.memory_space<vmem>>, vector<16x32xf32>
    tpu.vector_store %arg6[%c0_6, %c0_7], %7 {strides = array<i32>} : memref<16x32xf32, #tpu.memory_space<vmem>>, vector<16x32xf32>,
    %c0_i32_8 = arith.constant 0 : i32
    %9 = arith.cmpi eq, %arg2, %c0_i32_8 : i32
    %10 = arith.extui %9 : i1 to i32
    %c0_i32_9 = arith.constant 0 : i32
    %11 = arith.cmpi ne, %10, %c0_i32_9 : i32
    scf.if %11 {
      %c0_10 = arith.constant 0 : index
      %c0_11 = arith.constant 0 : index
      %12 = vector.load %arg6[%c0_10, %c0_11] : memref<16x32xf32, #tpu.memory_space<vmem>>, vector<16x32xf32>
      %13 = arith.truncf %12 : vector<16x32xf32> to vector<16x32xbf16>
      %c0_12 = arith.constant 0 : index
      %c0_13 = arith.constant 0 : index
      %14 = vector.load %arg5[%c0_12, %c0_13] : memref<16x32xbf16, #tpu.memory_space<vmem>>, vector<16x32xbf16>
      tpu.vector_store %arg5[%c0_12, %c0_13], %13 {strides = array<i32>} : memref<16x32xbf16, #tpu.memory_space<vmem>>, vector<16x32xbf16>,
    } else {
    }
    return
  }
  func.func @transform_0(%arg0: i32, %arg1: i32, %arg2: i32) -> (i32, i32) {
    %c0_i32 = arith.constant 0 : i32
    return %arg0, %arg2 : i32, i32
  }
  func.func @transform_1(%arg0: i32, %arg1: i32, %arg2: i32) -> (i32, i32) {
    %c0_i32 = arith.constant 0 : i32
    return %arg2, %arg1 : i32, i32
  }
  func.func @transform_2(%arg0: i32, %arg1: i32, %arg2: i32) -> (i32, i32) {
    %c0_i32 = arith.constant 0 : i32
    return %arg0, %arg1 : i32, i32
  }
}

module attributes {stable_mosaic.version = 11 : i64} {
  func.func @kernel(%arg0: i32, %arg1: i32, %arg2: i32, %arg3: memref<16x32xbf16, #tpu.memory_space<vmem>>, %arg4: memref<32x64xbf16, #tpu.memory_space<vmem>>, %arg5: memref<1x64xf32, #tpu.memory_space<vmem>>, %arg6: memref<16x64xbf16, #tpu.memory_space<vmem>>, %arg7: memref<16x64xf32, #tpu.memory_space<vmem>>) attributes {dimension_semantics = [#tpu.dimension_semantics<parallel>, #tpu.dimension_semantics<parallel>, #tpu.dimension_semantics<arbitrary>], iteration_bounds = array<i64: 1, 1, 1>, scalar_prefetch = 0 : i64, scratch_operands = 1 : i64, tpu.core_type = #tpu.core_type<tc>, window_params = [{transform_indices = @transform_0, window_bounds = array<i64: 16, 32>}, {transform_indices = @transform_1, window_bounds = array<i64: 32, 64>}, {transform_indices = @transform_2, window_bounds = array<i64: 1, 64>}, {transform_indices = @transform_3, window_bounds = array<i64: 16, 64>}]} {
    %c0_i32 = arith.constant 0 : i32
    %0 = arith.cmpi eq, %arg2, %c0_i32 : i32
    %1 = arith.extui %0 : i1 to i32
    %c0_i32_0 = arith.constant 0 : i32
    %2 = arith.cmpi ne, %1, %c0_i32_0 : i32
    scf.if %2 {
      %cst_10 = arith.constant 0.000000e+00 : f32
      %12 = vector.broadcast %cst_10 : f32 to vector<16x64xf32>
      %c0_11 = arith.constant 0 : index
      %c0_12 = arith.constant 0 : index
      %13 = vector.load %arg7[%c0_11, %c0_12] : memref<16x64xf32, #tpu.memory_space<vmem>>, vector<16x64xf32>
      tpu.vector_store %arg7[%c0_11, %c0_12], %12 {strides = array<i32>} : memref<16x64xf32, #tpu.memory_space<vmem>>, vector<16x64xf32>,
    } else {
    }
    %c0 = arith.constant 0 : index
    %c0_1 = arith.constant 0 : index
    %3 = vector.load %arg7[%c0, %c0_1] : memref<16x64xf32, #tpu.memory_space<vmem>>, vector<16x64xf32>
    %c0_2 = arith.constant 0 : index
    %c0_3 = arith.constant 0 : index
    %4 = vector.load %arg3[%c0_2, %c0_3] : memref<16x32xbf16, #tpu.memory_space<vmem>>, vector<16x32xbf16>
    %c0_4 = arith.constant 0 : index
    %c0_5 = arith.constant 0 : index
    %5 = vector.load %arg4[%c0_4, %c0_5] : memref<32x64xbf16, #tpu.memory_space<vmem>>, vector<32x64xbf16>
    %cst = arith.constant dense<0.000000e+00> : vector<16x64xf32>
    %6 = tpu.matmul %4, %5, %cst {dimension_numbers = #tpu.dot_dimension_numbers<[1], [0], [0], [1], [0, 0, 1, 1], [], []>} : vector<16x32xbf16>, vector<32x64xbf16>, vector<16x64xf32> -> vector<16x64xf32>
    %7 = arith.addf %3, %6 : vector<16x64xf32>
    %c0_6 = arith.constant 0 : index
    %c0_7 = arith.constant 0 : index
    %8 = vector.load %arg7[%c0_6, %c0_7] : memref<16x64xf32, #tpu.memory_space<vmem>>, vector<16x64xf32>
    tpu.vector_store %arg7[%c0_6, %c0_7], %7 {strides = array<i32>} : memref<16x64xf32, #tpu.memory_space<vmem>>, vector<16x64xf32>,
    %c0_i32_8 = arith.constant 0 : i32
    %9 = arith.cmpi eq, %arg2, %c0_i32_8 : i32
    %10 = arith.extui %9 : i1 to i32
    %c0_i32_9 = arith.constant 0 : i32
    %11 = arith.cmpi ne, %10, %c0_i32_9 : i32
    scf.if %11 {
      %c0_10 = arith.constant 0 : index
      %c0_11 = arith.constant 0 : index
      %12 = vector.load %arg7[%c0_10, %c0_11] : memref<16x64xf32, #tpu.memory_space<vmem>>, vector<16x64xf32>
      %c0_12 = arith.constant 0 : index
      %c0_13 = arith.constant 0 : index
      %13 = vector.load %arg5[%c0_12, %c0_13] : memref<1x64xf32, #tpu.memory_space<vmem>>, vector<1x64xf32>
      %14 = vector.broadcast %13 : vector<1x64xf32> to vector<16x64xf32>
      %15 = arith.addf %12, %14 : vector<16x64xf32>
      %cst_14 = arith.constant 0.000000e+00 : f32
      %16 = vector.broadcast %cst_14 : f32 to vector<16x64xf32>
      %17 = arith.maximumf %15, %16 : vector<16x64xf32>
      %18 = arith.truncf %17 : vector<16x64xf32> to vector<16x64xbf16>
      %c0_15 = arith.constant 0 : index
      %c0_16 = arith.constant 0 : index
      %19 = vector.load %arg6[%c0_15, %c0_16] : memref<16x64xbf16, #tpu.memory_space<vmem>>, vector<16x64xbf16>
      tpu.vector_store %arg6[%c0_15, %c0_16], %18 {strides = array<i32>} : memref<16x64xbf16, #tpu.memory_space<vmem>>, vector<16x64xbf16>,
    } else {
    }
    return
  }
  func.func @transform_0(%arg0: i32, %arg1: i32, %arg2: i32) -> (i32, i32) {
    %c0_i32 = arith.constant 0 : i32
    return %arg0, %arg2 : i32, i32
  }
  func.func @transform_1(%arg0: i32, %arg1: i32, %arg2: i32) -> (i32, i32) {
    %c0_i32 = arith.constant 0 : i32
    return %arg2, %arg1 : i32, i32
  }
  func.func @transform_2(%arg0: i32, %arg1: i32, %arg2: i32) -> (i32, i32) {
    %c0_i32 = arith.constant 0 : i32
    %c0_i32_0 = arith.constant 0 : i32
    return %c0_i32, %arg1 : i32, i32
  }
  func.func @transform_3(%arg0: i32, %arg1: i32, %arg2: i32) -> (i32, i32) {
    %c0_i32 = arith.constant 0 : i32
    return %arg0, %arg1 : i32, i32
  }
}

module attributes {stable_mosaic.version = 11 : i64} {
  func.func @_attention_kernel(%arg0: i32, %arg1: memref<1x4x8x8xbf16, #tpu.memory_space<vmem>>, %arg2: memref<1x4x8x8xbf16, #tpu.memory_space<vmem>>, %arg3: memref<1x4x8x8xbf16, #tpu.memory_space<vmem>>, %arg4: memref<1x1x8xf32, #tpu.memory_space<vmem>>, %arg5: memref<1x4x8x8xbf16, #tpu.memory_space<vmem>>) attributes {dimension_semantics = [#tpu.dimension_semantics<parallel>], iteration_bounds = array<i64: 2>, scalar_prefetch = 0 : i64, scratch_operands = 0 : i64, tpu.core_type = #tpu.core_type<tc>, window_params = [{transform_indices = @transform_0, window_bounds = array<i64: 1, 4, 8, 8>}, {transform_indices = @transform_1, window_bounds = array<i64: 1, 4, 8, 8>}, {transform_indices = @transform_2, window_bounds = array<i64: 1, 4, 8, 8>}, {transform_indices = @transform_3, window_bounds = array<i64: 1, 1, 8>}, {transform_indices = @transform_4, window_bounds = array<i64: 1, 4, 8, 8>}]} {
    %c0 = arith.constant 0 : index
    %c0_0 = arith.constant 0 : index
    %c0_1 = arith.constant 0 : index
    %c0_2 = arith.constant 0 : index
    %0 = vector.load %arg1[%c0, %c0_0, %c0_1, %c0_2] : memref<1x4x8x8xbf16, #tpu.memory_space<vmem>>, vector<1x4x8x8xbf16>
    %1 = vector.shape_cast %0 : vector<1x4x8x8xbf16> to vector<4x8x8xbf16>
    %cst = arith.constant 3.535160e-01 : bf16
    %2 = vector.broadcast %cst : bf16 to vector<4x8x8xbf16>
    %3 = arith.mulf %1, %2 : vector<4x8x8xbf16>
    %c0_3 = arith.constant 0 : index
    %c0_4 = arith.constant 0 : index
    %c0_5 = arith.constant 0 : index
    %c0_6 = arith.constant 0 : index
    %4 = vector.load %arg2[%c0_3, %c0_4, %c0_5, %c0_6] : memref<1x4x8x8xbf16, #tpu.memory_space<vmem>>, vector<1x4x8x8xbf16>
    %5 = vector.shape_cast %4 : vector<1x4x8x8xbf16> to vector<4x8x8xbf16>
    %c0_7 = arith.constant 0 : index
    %c0_8 = arith.constant 0 : index
    %c0_9 = arith.constant 0 : index
    %c0_10 = arith.constant 0 : index
    %6 = vector.load %arg3[%c0_7, %c0_8, %c0_9, %c0_10] : memref<1x4x8x8xbf16, #tpu.memory_space<vmem>>, vector<1x4x8x8xbf16>
    %7 = vector.shape_cast %6 : vector<1x4x8x8xbf16> to vector<4x8x8xbf16>
    %c0_11 = arith.constant 0 : index
    %c0_12 = arith.constant 0 : index
    %c0_13 = arith.constant 0 : index
    %8 = vector.load %arg4[%c0_11, %c0_12, %c0_13] : memref<1x1x8xf32, #tpu.memory_space<vmem>>, vector<1x1x8xf32>
    %9 = vector.shape_cast %8 : vector<1x1x8xf32> to vector<1x8xf32>
    "tpu.trace_start"() <{level = 10 : i32, message = "hqd,hkd->hqk"}> : () -> ()
    %cst_14 = arith.constant dense<0.000000e+00> : vector<4x8x8xf32>
    %10 = tpu.matmul %3, %5, %cst_14 {dimension_numbers = #tpu.dot_dimension_numbers<[2], [2], [1], [1], [0, 0, 0, 1, 1, 1], [0], [0]>} : vector<4x8x8xbf16>, vector<4x8x8xbf16>, vector<4x8x8xf32> -> vector<4x8x8xf32>
    %cst_15 = arith.constant 0.000000e+00 : f32
    "tpu.trace_stop"() : () -> ()
    %11 = vector.broadcast %cst_15 : f32 to vector<1x8xf32>
    %12 = arith.cmpf ogt, %9, %11 : vector<1x8xf32>
    %13 = vector.shape_cast %12 : vector<1x8xi1> to vector<1x1x8xi1>
    %cst_16 = arith.constant -1.000000e+09 : f32
    %14 = vector.shape_cast %13 : vector<1x1x8xi1> to vector<1x1x8xi1>
    %15 = vector.broadcast %14 : vector<1x1x8xi1> to vector<4x8x8xi1>
    %16 = vector.broadcast %cst_16 : f32 to vector<4x8x8xf32>
    %17 = arith.select %15, %10, %16 : vector<4x8x8xi1>, vector<4x8x8xf32>
    %cst_17 = arith.constant dense<0xFF800000> : vector<4x8xf32>
    %18 = vector.multi_reduction <maximumf>, %17, %cst_17 [2] : vector<4x8x8xf32> to vector<4x8xf32>
    %19 = vector.shape_cast %18 : vector<4x8xf32> to vector<4x8x1xf32>
    %20 = vector.broadcast %19 : vector<4x8x1xf32> to vector<4x8x8xf32>
    %21 = arith.subf %17, %20 : vector<4x8x8xf32>
    %22 = math.exp %21 : vector<4x8x8xf32>
    %cst_18 = arith.constant dense<0.000000e+00> : vector<4x8xf32>
    %23 = vector.multi_reduction <add>, %22, %cst_18 [2] : vector<4x8x8xf32> to vector<4x8xf32>
    %24 = vector.shape_cast %23 : vector<4x8xf32> to vector<4x8x1xf32>
    %25 = tpu.reciprocal %24 {approx = true} : vector<4x8x1xf32> -> vector<4x8x1xf32>
    %26 = vector.broadcast %25 : vector<4x8x1xf32> to vector<4x8x8xf32>
    %27 = arith.mulf %22, %26 : vector<4x8x8xf32>
    %28 = arith.truncf %27 : vector<4x8x8xf32> to vector<4x8x8xbf16>
    "tpu.trace_start"() <{level = 10 : i32, message = "hqk,hkd->hqd"}> : () -> ()
    %cst_19 = arith.constant dense<0.000000e+00> : vector<4x8x8xf32>
    %29 = tpu.matmul %28, %7, %cst_19 {dimension_numbers = #tpu.dot_dimension_numbers<[2], [1], [1], [2], [0, 0, 0, 1, 1, 2], [0], [0]>} : vector<4x8x8xbf16>, vector<4x8x8xbf16>, vector<4x8x8xf32> -> vector<4x8x8xf32>
    "tpu.trace_stop"() : () -> ()
    %30 = arith.truncf %29 : vector<4x8x8xf32> to vector<4x8x8xbf16>
    %c0_20 = arith.constant 0 : index
    %c0_21 = arith.constant 0 : index
    %c0_22 = arith.constant 0 : index
    %c0_23 = arith.constant 0 : index
    %31 = vector.load %arg5[%c0_20, %c0_21, %c0_22, %c0_23] : memref<1x4x8x8xbf16, #tpu.memory_space<vmem>>, vector<1x4x8x8xbf16>
    %32 = vector.shape_cast %31 : vector<1x4x8x8xbf16> to vector<4x8x8xbf16>
    %33 = vector.shape_cast %30 : vector<4x8x8xbf16> to vector<1x4x8x8xbf16>
    tpu.vector_store %arg5[%c0_20, %c0_21, %c0_22, %c0_23], %33 {strides = array<i32>} : memref<1x4x8x8xbf16, #tpu.memory_space<vmem>>, vector<1x4x8x8xbf16>,
    return
  }
  func.func @transform_0(%arg0: i32) -> (i32, i32, i32, i32) {
    %c0_i32 = arith.constant 0 : i32
    %c0_i32_0 = arith.constant 0 : i32
    %c0_i32_1 = arith.constant 0 : i32
    %c0_i32_2 = arith.constant 0 : i32
    return %arg0, %c0_i32, %c0_i32_0, %c0_i32_1 : i32, i32, i32, i32
  }
  func.func @transform_1(%arg0: i32) -> (i32, i32, i32, i32) {
    %c0_i32 = arith.constant 0 : i32
    %c0_i32_0 = arith.constant 0 : i32
    %c0_i32_1 = arith.constant 0 : i32
    %c0_i32_2 = arith.constant 0 : i32
    return %arg0, %c0_i32, %c0_i32_0, %c0_i32_1 : i32, i32, i32, i32
  }
  func.func @transform_2(%arg0: i32) -> (i32, i32, i32, i32) {
    %c0_i32 = arith.constant 0 : i32
    %c0_i32_0 = arith.constant 0 : i32
    %c0_i32_1 = arith.constant 0 : i32
    %c0_i32_2 = arith.constant 0 : i32
    return %arg0, %c0_i32, %c0_i32_0, %c0_i32_1 : i32, i32, i32, i32
  }
  func.func @transform_3(%arg0: i32) -> (i32, i32, i32) {
    %c0_i32 = arith.constant 0 : i32
    %c0_i32_0 = arith.constant 0 : i32
    %c0_i32_1 = arith.constant 0 : i32
    return %arg0, %c0_i32, %c0_i32_0 : i32, i32, i32
  }
  func.func @transform_4(%arg0: i32) -> (i32, i32, i32, i32) {
    %c0_i32 = arith.constant 0 : i32
    %c0_i32_0 = arith.constant 0 : i32
    %c0_i32_1 = arith.constant 0 : i32
    %c0_i32_2 = arith.constant 0 : i32
    return %arg0, %c0_i32, %c0_i32_0, %c0_i32_1 : i32, i32, i32, i32
  }
}

module attributes {stable_mosaic.version = 11 : i64} {
  func.func @kernel(%arg0: i32, %arg1: i32, %arg2: i32, %arg3: memref<16x64xbf16, #tpu.memory_space<vmem>>, %arg4: memref<64x32xbf16, #tpu.memory_space<vmem>>, %arg5: memref<1x32xf32, #tpu.memory_space<vmem>>, %arg6: memref<16x32xf32, #tpu.memory_space<vmem>>, %arg7: memref<1x32xf32, #tpu.memory_space<vmem>>, %arg8: memref<1x32xf32, #tpu.memory_space<vmem>>, %arg9: memref<16x32xf32, #tpu.memory_space<vmem>>, %arg10: memref<16x32xf32, #tpu.memory_space<vmem>>) attributes {dimension_semantics = [#tpu.dimension_semantics<parallel>, #tpu.dimension_semantics<parallel>, #tpu.dimension_semantics<arbitrary>], iteration_bounds = array<i64: 1, 1, 1>, scalar_prefetch = 0 : i64, scratch_operands = 1 : i64, tpu.core_type = #tpu.core_type<tc>, window_params = [{transform_indices = @transform_0, window_bounds = array<i64: 16, 64>}, {transform_indices = @transform_1, window_bounds = array<i64: 64, 32>}, {transform_indices = @transform_2, window_bounds = array<i64: 1, 32>}, {transform_indices = @transform_3, window_bounds = array<i64: 16, 32>}, {transform_indices = @transform_4, window_bounds = array<i64: 1, 32>}, {transform_indices = @transform_5, window_bounds = array<i64: 1, 32>}, {transform_indices = @transform_6, window_bounds = array<i64: 16, 32>}]} {
    %c0_i32 = arith.constant 0 : i32
    %0 = arith.cmpi eq, %arg2, %c0_i32 : i32
    %1 = arith.extui %0 : i1 to i32
    %c0_i32_0 = arith.constant 0 : i32
    %2 = arith.cmpi ne, %1, %c0_i32_0 : i32
    scf.if %2 {
      %cst_10 = arith.constant 0.000000e+00 : f32
      %12 = vector.broadcast %cst_10 : f32 to vector<16x32xf32>
      %c0_11 = arith.constant 0 : index
      %c0_12 = arith.constant 0 : index
      %13 = vector.load %arg10[%c0_11, %c0_12] : memref<16x32xf32, #tpu.memory_space<vmem>>, vector<16x32xf32>
      tpu.vector_store %arg10[%c0_11, %c0_12], %12 {strides = array<i32>} : memref<16x32xf32, #tpu.memory_space<vmem>>, vector<16x32xf32>,
    } else {
    }
    %c0 = arith.constant 0 : index
    %c0_1 = arith.constant 0 : index
    %3 = vector.load %arg10[%c0, %c0_1] : memref<16x32xf32, #tpu.memory_space<vmem>>, vector<16x32xf32>
    %c0_2 = arith.constant 0 : index
    %c0_3 = arith.constant 0 : index
    %4 = vector.load %arg3[%c0_2, %c0_3] : memref<16x64xbf16, #tpu.memory_space<vmem>>, vector<16x64xbf16>
    %c0_4 = arith.constant 0 : index
    %c0_5 = arith.constant 0 : index
    %5 = vector.load %arg4[%c0_4, %c0_5] : memref<64x32xbf16, #tpu.memory_space<vmem>>, vector<64x32xbf16>
    %cst = arith.constant dense<0.000000e+00> : vector<16x32xf32>
    %6 = tpu.matmul %4, %5, %cst {dimension_numbers = #tpu.dot_dimension_numbers<[1], [0], [0], [1], [0, 0, 1, 1], [], []>} : vector<16x64xbf16>, vector<64x32xbf16>, vector<16x32xf32> -> vector<16x32xf32>
    %7 = arith.addf %3, %6 : vector<16x32xf32>
    %c0_6 = arith.constant 0 : index
    %c0_7 = arith.constant 0 : index
    %8 = vector.load %arg10[%c0_6, %c0_7] : memref<16x32xf32, #tpu.memory_space<vmem>>, vector<16x32xf32>
    tpu.vector_store %arg10[%c0_6, %c0_7], %7 {strides = array<i32>} : memref<16x32xf32, #tpu.memory_space<vmem>>, vector<16x32xf32>,
    %c0_i32_8 = arith.constant 0 : i32
    %9 = arith.cmpi eq, %arg2, %c0_i32_8 : i32
    %10 = arith.extui %9 : i1 to i32
    %c0_i32_9 = arith.constant 0 : i32
    %11 = arith.cmpi ne, %10, %c0_i32_9 : i32
    scf.if %11 {
      %c0_10 = arith.constant 0 : index
      %c0_11 = arith.constant 0 : index
      %12 = vector.load %arg10[%c0_10, %c0_11] : memref<16x32xf32, #tpu.memory_space<vmem>>, vector<16x32xf32>
      %c0_12 = arith.constant 0 : index
      %c0_13 = arith.constant 0 : index
      %13 = vector.load %arg5[%c0_12, %c0_13] : memref<1x32xf32, #tpu.memory_space<vmem>>, vector<1x32xf32>
      %14 = vector.broadcast %13 : vector<1x32xf32> to vector<16x32xf32>
      %15 = arith.addf %12, %14 : vector<16x32xf32>
      %c0_14 = arith.constant 0 : index
      %c0_15 = arith.constant 0 : index
      %16 = vector.load %arg6[%c0_14, %c0_15] : memref<16x32xf32, #tpu.memory_space<vmem>>, vector<16x32xf32>
      %17 = arith.addf %15, %16 : vector<16x32xf32>
      %cst_16 = arith.constant dense<0.000000e+00> : vector<16xf32>
      %18 = vector.multi_reduction <add>, %17, %cst_16 [1] : vector<16x32xf32> to vector<16xf32>
      %19 = vector.shape_cast %18 : vector<16xf32> to vector<16x1xf32>
      %cst_17 = arith.constant 3.200000e+01 : f32
      %20 = vector.broadcast %cst_17 : f32 to vector<16x1xf32>
      %21 = arith.divf %19, %20 : vector<16x1xf32>
      %22 = vector.broadcast %21 : vector<16x1xf32> to vector<16x32xf32>
      %23 = arith.subf %17, %22 : vector<16x32xf32>
      %24 = arith.mulf %23, %23 : vector<16x32xf32>
      %cst_18 = arith.constant dense<0.000000e+00> : vector<16xf32>
      %25 = vector.multi_reduction <add>, %24, %cst_18 [1] : vector<16x32xf32> to vector<16xf32>
      %26 = vector.shape_cast %25 : vector<16xf32> to vector<16x1xf32>
      %cst_19 = arith.constant 3.200000e+01 : f32
      %27 = vector.broadcast %cst_19 : f32 to vector<16x1xf32>
      %28 = arith.divf %26, %27 : vector<16x1xf32>
      %29 = vector.broadcast %21 : vector<16x1xf32> to vector<16x32xf32>
      %30 = arith.subf %17, %29 : vector<16x32xf32>
      %cst_20 = arith.constant 9.99999997E-7 : f32
      %31 = vector.broadcast %cst_20 : f32 to vector<16x1xf32>
      %32 = arith.addf %28, %31 : vector<16x1xf32>
      %33 = math.rsqrt %32 : vector<16x1xf32>
      %34 = vector.broadcast %33 : vector<16x1xf32> to vector<16x32xf32>
      %35 = arith.mulf %30, %34 : vector<16x32xf32>
      %c0_21 = arith.constant 0 : index
      %c0_22 = arith.constant 0 : index
      %36 = vector.load %arg7[%c0_21, %c0_22] : memref<1x32xf32, #tpu.memory_space<vmem>>, vector<1x32xf32>
      %37 = vector.broadcast %36 : vector<1x32xf32> to vector<16x32xf32>
      %38 = arith.mulf %35, %37 : vector<16x32xf32>
      %c0_23 = arith.constant 0 : index
      %c0_24 = arith.constant 0 : index
      %39 = vector.load %arg8[%c0_23, %c0_24] : memref<1x32xf32, #tpu.memory_space<vmem>>, vector<1x32xf32>
      %40 = vector.broadcast %39 : vector<1x32xf32> to vector<16x32xf32>
      %41 = arith.addf %38, %40 : vector<16x32xf32>
      %c0_25 = arith.constant 0 : index
      %c0_26 = arith.constant 0 : index
      %42 = vector.load %arg9[%c0_25, %c0_26] : memref<16x32xf32, #tpu.memory_space<vmem>>, vector<16x32xf32>
      tpu.vector_store %arg9[%c0_25, %c0_26], %41 {strides = array<i32>} : memref<16x32xf32, #tpu.memory_space<vmem>>, vector<16x32xf32>,
    } else {
    }
    return
  }
  func.func @transform_0(%arg0: i32, %arg1: i32, %arg2: i32) -> (i32, i32) {
    %c0_i32 = arith.constant 0 : i32
    return %arg0, %arg2 : i32, i32
  }
  func.func @transform_1(%arg0: i32, %arg1: i32, %arg2: i32) -> (i32, i32) {
    %c0_i32 = arith.constant 0 : i32
    return %arg2, %arg1 : i32, i32
  }
  func.func @transform_2(%arg0: i32, %arg1: i32, %arg2: i32) -> (i32, i32) {
    %c0_i32 = arith.constant 0 : i32
    %c0_i32_0 = arith.constant 0 : i32
    return %c0_i32, %arg1 : i32, i32
  }
  func.func @transform_3(%arg0: i32, %arg1: i32, %arg2: i32) -> (i32, i32) {
    %c0_i32 = arith.constant 0 : i32
    return %arg0, %arg1 : i32, i32
  }
  func.func @transform_4(%arg0: i32, %arg1: i32, %arg2: i32) -> (i32, i32) {
    %c0_i32 = arith.constant 0 : i32
    %c0_i32_0 = arith.constant 0 : i32
    return %c0_i32, %arg1 : i32, i32
  }
  func.func @transform_5(%arg0: i32, %arg1: i32, %arg2: i32) -> (i32, i32) {
    %c0_i32 = arith.constant 0 : i32
    %c0_i32_0 = arith.constant 0 : i32
    return %c0_i32, %arg1 : i32, i32
  }
  func.func @transform_6(%arg0: i32, %arg1: i32, %arg2: i32) -> (i32, i32) {
    %c0_i32 = arith.constant 0 : i32
    return %arg0, %arg1 : i32, i32
  }
}

module attributes {stable_mosaic.version = 11 : i64} {
  func.func @kernel(%arg0: i32, %arg1: i32, %arg2: i32, %arg3: memref<16x32xbf16, #tpu.memory_space<vmem>>, %arg4: memref<32x16xbf16, #tpu.memory_space<vmem>>, %arg5: memref<16x16xf32, #tpu.memory_space<vmem>>, %arg6: memref<16x16xf32, #tpu.memory_space<vmem>>) attributes {dimension_semantics = [#tpu.dimension_semantics<parallel>, #tpu.dimension_semantics<parallel>, #tpu.dimension_semantics<arbitrary>], iteration_bounds = array<i64: 1, 1, 1>, scalar_prefetch = 0 : i64, scratch_operands = 1 : i64, tpu.core_type = #tpu.core_type<tc>, window_params = [{transform_indices = @transform_0, window_bounds = array<i64: 16, 32>}, {transform_indices = @transform_1, window_bounds = array<i64: 32, 16>}, {transform_indices = @transform_2, window_bounds = array<i64: 16, 16>}]} {
    %c0_i32 = arith.constant 0 : i32
    %0 = arith.cmpi eq, %arg2, %c0_i32 : i32
    %1 = arith.extui %0 : i1 to i32
    %c0_i32_0 = arith.constant 0 : i32
    %2 = arith.cmpi ne, %1, %c0_i32_0 : i32
    scf.if %2 {
      %cst_10 = arith.constant 0.000000e+00 : f32
      %12 = vector.broadcast %cst_10 : f32 to vector<16x16xf32>
      %c0_11 = arith.constant 0 : index
      %c0_12 = arith.constant 0 : index
      %13 = vector.load %arg6[%c0_11, %c0_12] : memref<16x16xf32, #tpu.memory_space<vmem>>, vector<16x16xf32>
      tpu.vector_store %arg6[%c0_11, %c0_12], %12 {strides = array<i32>} : memref<16x16xf32, #tpu.memory_space<vmem>>, vector<16x16xf32>,
    } else {
    }
    %c0 = arith.constant 0 : index
    %c0_1 = arith.constant 0 : index
    %3 = vector.load %arg6[%c0, %c0_1] : memref<16x16xf32, #tpu.memory_space<vmem>>, vector<16x16xf32>
    %c0_2 = arith.constant 0 : index
    %c0_3 = arith.constant 0 : index
    %4 = vector.load %arg3[%c0_2, %c0_3] : memref<16x32xbf16, #tpu.memory_space<vmem>>, vector<16x32xbf16>
    %c0_4 = arith.constant 0 : index
    %c0_5 = arith.constant 0 : index
    %5 = vector.load %arg4[%c0_4, %c0_5] : memref<32x16xbf16, #tpu.memory_space<vmem>>, vector<32x16xbf16>
    %cst = arith.constant dense<0.000000e+00> : vector<16x16xf32>
    %6 = tpu.matmul %4, %5, %cst {dimension_numbers = #tpu.dot_dimension_numbers<[1], [0], [0], [1], [0, 0, 1, 1], [], []>} : vector<16x32xbf16>, vector<32x16xbf16>, vector<16x16xf32> -> vector<16x16xf32>
    %7 = arith.addf %3, %6 : vector<16x16xf32>
    %c0_6 = arith.constant 0 : index
    %c0_7 = arith.constant 0 : index
    %8 = vector.load %arg6[%c0_6, %c0_7] : memref<16x16xf32, #tpu.memory_space<vmem>>, vector<16x16xf32>
    tpu.vector_store %arg6[%c0_6, %c0_7], %7 {strides = array<i32>} : memref<16x16xf32, #tpu.memory_space<vmem>>, vector<16x16xf32>,
    %c0_i32_8 = arith.constant 0 : i32
    %9 = arith.cmpi eq, %arg2, %c0_i32_8 : i32
    %10 = arith.extui %9 : i1 to i32
    %c0_i32_9 = arith.constant 0 : i32
    %11 = arith.cmpi ne, %10, %c0_i32_9 : i32
    scf.if %11 {
      %c0_10 = arith.constant 0 : index
      %c0_11 = arith.constant 0 : index
      %12 = vector.load %arg6[%c0_10, %c0_11] : memref<16x16xf32, #tpu.memory_space<vmem>>, vector<16x16xf32>
      %cst_12 = arith.constant 0.176776692 : f32
      %13 = vector.broadcast %cst_12 : f32 to vector<16x16xf32>
      %14 = arith.mulf %12, %13 : vector<16x16xf32>
      %c0_13 = arith.constant 0 : index
      %c0_14 = arith.constant 0 : index
      %15 = vector.load %arg5[%c0_13, %c0_14] : memref<16x16xf32, #tpu.memory_space<vmem>>, vector<16x16xf32>
      tpu.vector_store %arg5[%c0_13, %c0_14], %14 {strides = array<i32>} : memref<16x16xf32, #tpu.memory_space<vmem>>, vector<16x16xf32>,
    } else {
    }
    return
  }
  func.func @transform_0(%arg0: i32, %arg1: i32, %arg2: i32) -> (i32, i32) {
    %c0_i32 = arith.constant 0 : i32
    return %arg0, %arg2 : i32, i32
  }
  func.func @transform_1(%arg0: i32, %arg1: i32, %arg2: i32) -> (i32, i32) {
    %c0_i32 = arith.constant 0 : i32
    return %arg2, %arg1 : i32, i32
  }
  func.func @transform_2(%arg0: i32, %arg1: i32, %arg2: i32) -> (i32, i32) {
    %c0_i32 = arith.constant 0 : i32
    return %arg0, %arg1 : i32, i32
  }
}

module attributes {stable_mosaic.version = 11 : i64} {
  func.func @kernel(%arg0: i32, %arg1: i32, %arg2: i32, %arg3: memref<16x32xbf16, #tpu.memory_space<vmem>>, %arg4: memref<32x64xbf16, #tpu.memory_space<vmem>>, %arg5: memref<16x64xbf16, #tpu.memory_space<vmem>>, %arg6: memref<16x64xf32, #tpu.memory_space<vmem>>) attributes {dimension_semantics = [#tpu.dimension_semantics<parallel>, #tpu.dimension_semantics<parallel>, #tpu.dimension_semantics<arbitrary>], iteration_bounds = array<i64: 1, 1, 1>, scalar_prefetch = 0 : i64, scratch_operands = 1 : i64, tpu.core_type = #tpu.core_type<tc>, window_params = [{transform_indices = @transform_0, window_bounds = array<i64: 16, 32>}, {transform_indices = @transform_1, window_bounds = array<i64: 32, 64>}, {transform_indices = @transform_2, window_bounds = array<i64: 16, 64>}]} {
    %c0_i32 = arith.constant 0 : i32
    %0 = arith.cmpi eq, %arg2, %c0_i32 : i32
    %1 = arith.extui %0 : i1 to i32
    %c0_i32_0 = arith.constant 0 : i32
    %2 = arith.cmpi ne, %1, %c0_i32_0 : i32
    scf.if %2 {
      %cst_10 = arith.constant 0.000000e+00 : f32
      %12 = vector.broadcast %cst_10 : f32 to vector<16x64xf32>
      %c0_11 = arith.constant 0 : index
      %c0_12 = arith.constant 0 : index
      %13 = vector.load %arg6[%c0_11, %c0_12] : memref<16x64xf32, #tpu.memory_space<vmem>>, vector<16x64xf32>
      tpu.vector_store %arg6[%c0_11, %c0_12], %12 {strides = array<i32>} : memref<16x64xf32, #tpu.memory_space<vmem>>, vector<16x64xf32>,
    } else {
    }
    %c0 = arith.constant 0 : index
    %c0_1 = arith.constant 0 : index
    %3 = vector.load %arg6[%c0, %c0_1] : memref<16x64xf32, #tpu.memory_space<vmem>>, vector<16x64xf32>
    %c0_2 = arith.constant 0 : index
    %c0_3 = arith.constant 0 : index
    %4 = vector.load %arg3[%c0_2, %c0_3] : memref<16x32xbf16, #tpu.memory_space<vmem>>, vector<16x32xbf16>
    %c0_4 = arith.constant 0 : index
    %c0_5 = arith.constant 0 : index
    %5 = vector.load %arg4[%c0_4, %c0_5] : memref<32x64xbf16, #tpu.memory_space<vmem>>, vector<32x64xbf16>
    %cst = arith.constant dense<0.000000e+00> : vector<16x64xf32>
    %6 = tpu.matmul %4, %5, %cst {dimension_numbers = #tpu.dot_dimension_numbers<[1], [0], [0], [1], [0, 0, 1, 1], [], []>} : vector<16x32xbf16>, vector<32x64xbf16>, vector<16x64xf32> -> vector<16x64xf32>
    %7 = arith.addf %3, %6 : vector<16x64xf32>
    %c0_6 = arith.constant 0 : index
    %c0_7 = arith.constant 0 : index
    %8 = vector.load %arg6[%c0_6, %c0_7] : memref<16x64xf32, #tpu.memory_space<vmem>>, vector<16x64xf32>
    tpu.vector_store %arg6[%c0_6, %c0_7], %7 {strides = array<i32>} : memref<16x64xf32, #tpu.memory_space<vmem>>, vector<16x64xf32>,
    %c0_i32_8 = arith.constant 0 : i32
    %9 = arith.cmpi eq, %arg2, %c0_i32_8 : i32
    %10 = arith.extui %9 : i1 to i32
    %c0_i32_9 = arith.constant 0 : i32
    %11 = arith.cmpi ne, %10, %c0_i32_9 : i32
    scf.if %11 {
      %c0_10 = arith.constant 0 : index
      %c0_11 = arith.constant 0 : index
      %12 = vector.load %arg6[%c0_10, %c0_11] : memref<16x64xf32, #tpu.memory_space<vmem>>, vector<16x64xf32>
      %13 = arith.truncf %12 : vector<16x64xf32> to vector<16x64xbf16>
      %c0_12 = arith.constant 0 : index
      %c0_13 = arith.constant 0 : index
      %14 = vector.load %arg5[%c0_12, %c0_13] : memref<16x64xbf16, #tpu.memory_space<vmem>>, vector<16x64xbf16>
      tpu.vector_store %arg5[%c0_12, %c0_13], %13 {strides = array<i32>} : memref<16x64xbf16, #tpu.memory_space<vmem>>, vector<16x64xbf16>,
    } else {
    }
    return
  }
  func.func @transform_0(%arg0: i32, %arg1: i32, %arg2: i32) -> (i32, i32) {
    %c0_i32 = arith.constant 0 : i32
    return %arg0, %arg2 : i32, i32
  }
  func.func @transform_1(%arg0: i32, %arg1: i32, %arg2: i32) -> (i32, i32) {
    %c0_i32 = arith.constant 0 : i32
    return %arg2, %arg1 : i32, i32
  }
  func.func @transform_2(%arg0: i32, %arg1: i32, %arg2: i32) -> (i32, i32) {
    %c0_i32 = arith.constant 0 : i32
    return %arg0, %arg1 : i32, i32
  }
}

</mosaic_0001>

<bundles_post_ra>
// kernel: transformer_forward.45
= control target key start
LH: loop header
LB: loop body
LE: loop exit
PB: predicated region body
PF: predicated region fallthrough
CT: control target
= control target key end

     0   :  { %vm25_vm0 = vcmask 261120   ;;  %v179_v1 = vmov 0.0   ;;  %v180_v18 = vmov 32.0   ;;  %s249_s1 = inlined_call_operand.vmem [shape: bf16[32,32], index: 1, kind: input, shape index: {}]   ;;  %s250_s0 = inlined_call_operand.vmem [shape: bf16[16,32], index: 0, kind: input, shape index: {}]   ;;  %s251_s2 = inlined_call_operand.vmem [shape: f32[16,32], index: 2, kind: input, shape index: {}]   ;;  %s252_s3 = inlined_call_operand.vmem [shape: f32[1,32], index: 3, kind: input, shape index: {}]   ;;  %s253_s4 = inlined_call_operand.vmem [shape: f32[1,32], index: 4, kind: input, shape index: {}]   ;;  %s254_s5 = inlined_call_operand.vmem [shape: f32[16,32], index: 5, kind: output, shape index: {}]  }
   0x1   :  { %v168_v0 = vld [vmem:[%s249_s1 + $0x8] sm:$0xff]  ;;  %26 = vst.msk [vmem:[#allocation2] sm:$0xff] %vm25_vm0, %v179_v1  ;;  %v167_v2 = vld [vmem:[%s249_s1] sm:$0xff]  ;;  %173 = vrcp.f32 %v180_v18 }
   0x2   :  { %27 = vst.msk [vmem:[#allocation2 + $0x8] sm:$0xff] %vm25_vm0, %v179_v1  ;;  %63 = vmatpush.bf16.msra.mxu0 %v168_v0  ;;  %v166_v3 = vld [vmem:[%s250_s0] sm:$0xff]  ;;  %v81_v14 = vld [vmem:[%s251_s2 + $0x8] sm:$0xff] }
   0x3   :  { %v80_v9 = vld [vmem:[%s251_s2] sm:$0xff] }
   0x4   :  { %v171_v49 = vld [vmem:[%s252_s3] ss:$0 sm:$0xff] }
   0x5   :  { %v172_v52 = vld [vmem:[%s253_s4] ss:$0 sm:$0xff] }
   0x6   :  { %64 = vmatpush.bf16.msra.mxu0 %v167_v2 }
   0x7   :  { %v174_v19 = vpop.eup %173 }
   0x8   :  { %v28_v4 = vld [vmem:[#allocation2] sm:$0xff]  ;;  %v91_v20 = vmul.f32 32.0, %v174_v19  ;;  %vm95_vm1 = vweird.f32 %v174_v19 }
   0x9   :  { %165 = vmatmul.msk.bf16.vlgmr.msra.gmra.mxu0 %vm25_vm0, %v166_v3  ;;  %v29_v7 = vld [vmem:[#allocation2 + $0x8] sm:$0xff] }
   0xa   :  { %v92_v21 = vsub.f32 1.0, %v91_v20 }
   0xc   :  { %v93_v22 = vmul.f32 %v174_v19, %v92_v21 }
   0xe   :  { %v94_v23 = vadd.f32 %v174_v19, %v93_v22 }
  0x10   :  { %v96_v24 = vsel %vm95_vm1, %v174_v19, %v94_v23 }
  0x86   :  { %v66_v5 = vpop.f32.mrf.mxu0 }
  0x87   :  { %v71_v6 = vadd.f32 %v66_v5, %v28_v4 }
  0x89   :  { %73 = vst.msk [vmem:[#allocation2] sm:$0xff] %vm25_vm0, %v71_v6 }
  0x8e   :  { %v68_v8 = vpop.f32.mrf.mxu0 }
  0x8f   :  { %v72_v10 = vadd.f32 %v68_v8, %v29_v7 }
  0x90   :  { %v78_v11 = vld [vmem:[#allocation2] sm:$0xff] }
  0x91   :  { %74 = vst.msk [vmem:[#allocation2 + $0x8] sm:$0xff] %vm25_vm0, %v72_v10  ;;  %v82_v12 = vadd.f32 %v80_v9, %v78_v11 }
  0x93   :  { %v84_v13 = vsel %vm25_vm0, %v82_v12, 0.0 }
  0x94   :  { %85 = vadd.xlane.f32.xlu0 %v84_v13 }
  0x98   :  { %v79_v15 = vld [vmem:[#allocation2 + $0x8] sm:$0xff] }
  0x99   :  { %v83_v16 = vadd.f32 %v81_v14, %v79_v15 }
  0x9b   :  { %v87_v17 = vsel %vm25_vm0, %v83_v16, 0.0 }
  0x9c   :  { %88 = vadd.xlane.f32.xlu0 %v87_v17 }
 0x107   :  { %v86_v25 = vpop.xlane.xlu0 %85 }
 0x108   :  { %v97_v26 = vmul.f32 %v96_v24, %v86_v25 }
 0x10a   :  { %v99_v27 = vsub.f32 %v82_v12, %v97_v26 }
 0x10c   :  { %v101_v28 = vmul.f32 %v99_v27, %v99_v27 }
 0x10e   :  { %v103_v29 = vsel %vm25_vm0, %v101_v28, 0.0 }
 0x10f   :  { %104 = vadd.xlane.f32.xlu1 %v103_v29  ;;  %v89_v30 = vpop.xlane.xlu0 %88 }
 0x110   :  { %v98_v31 = vmul.f32 %v96_v24, %v89_v30 }
 0x112   :  { %v100_v32 = vsub.f32 %v83_v16, %v98_v31 }
 0x114   :  { %v102_v33 = vmul.f32 %v100_v32, %v100_v32 }
 0x116   :  { %v106_v34 = vsel %vm25_vm0, %v102_v33, 0.0 }
 0x117   :  { %107 = vadd.xlane.f32.xlu1 %v106_v34 }
 0x182   :  { %v105_v35 = vpop.xlane.xlu1 %104 }
 0x183   :  { %v109_v36 = vmul.f32 %v105_v35, %v96_v24 }
 0x185   :  { %v111_v37 = vadd.f32 1e-06, %v109_v36 }
 0x187   :  { %175 = vrsqrt.f32 %v111_v37  ;;  %vm119_vm3 = vweird.f32 %v111_v37 }
 0x18a   :  { %v108_v38 = vpop.xlane.xlu1 %107 }
 0x18b   :  { %v110_v39 = vmul.f32 %v108_v38, %v96_v24 }
 0x18d   :  { %v176_v40 = vpop.eup %175  ;;  %v112_v41 = vadd.f32 1e-06, %v110_v39 }
 0x18e   :  { %v114_v42 = vmul.f32 %v176_v40, %v111_v37  ;;  %vm120_vm2 = vweird.f32 %v176_v40 }
 0x18f   :  { %177 = vrsqrt.f32 %v112_v41  ;;  %vm121_vm4 = vmor %vm119_vm3, %vm120_vm2  ;;  %vm129_vm6 = vweird.f32 %v112_v41 }
 0x190   :  { %v115_v43 = vmul.f32 %v176_v40, %v114_v42 }
 0x192   :  { %v116_v44 = vmul.f32 0.5, %v115_v43 }
 0x194   :  { %v117_v45 = vsub.f32 1.5, %v116_v44 }
 0x195   :  { %v178_v46 = vpop.eup %177 }
 0x196   :  { %v118_v47 = vmul.f32 %v176_v40, %v117_v45  ;;  %v124_v48 = vmul.f32 %v178_v46, %v112_v41  ;;  %vm130_vm5 = vweird.f32 %v178_v46 }
 0x197   :  { %vm131_vm7 = vmor %vm129_vm6, %vm130_vm5 }
 0x198   :  { %v122_v50 = vsel %vm121_vm4, %v176_v40, %v118_v47  ;;  %v125_v51 = vmul.f32 %v178_v46, %v124_v48 }
 0x199   :  { %v133_v53 = vmul.f32 %v122_v50, %v99_v27 }
 0x19a   :  { %v126_v54 = vmul.f32 0.5, %v125_v51 }
 0x19b   :  { %v139_v55 = vmul.f32 %v171_v49, %v133_v53 }
 0x19c   :  { %v127_v56 = vsub.f32 1.5, %v126_v54 }
 0x19d   :  { %v145_v57 = vadd.f32 %v172_v52, %v139_v55 }
 0x19e   :  { %v128_v58 = vmul.f32 %v178_v46, %v127_v56 }
 0x19f   :  { %147 = vst.msk [vmem:[%s254_s5] sm:$0xff] %vm25_vm0, %v145_v57 }
 0x1a0   :  { %v132_v59 = vsel %vm131_vm7, %v178_v46, %v128_v58 }
 0x1a1   :  { %v134_v60 = vmul.f32 %v132_v59, %v100_v32 }
 0x1a3   :  { %v140_v61 = vmul.f32 %v171_v49, %v134_v60 }
 0x1a5   :  { %v146_v62 = vadd.f32 %v172_v52, %v140_v61 }
 0x1a7   :  { %148 = vst.msk [vmem:[%s254_s5 + $0x8] sm:$0xff] %vm25_vm0, %v146_v62 }

// kernel: transformer_forward.42
= control target key start
LH: loop header
LB: loop body
LE: loop exit
PB: predicated region body
PF: predicated region fallthrough
CT: control target
= control target key end

     0   :  { %vm16_vm0 = vcmask 261120   ;;  %v95_v4 = vmov 32.0   ;;  %s140_s0 = inlined_call_operand.vmem [shape: f32[16,32], index: 0, kind: input, shape index: {}]   ;;  %s141_s1 = inlined_call_operand.vmem [shape: f32[1,32], index: 1, kind: input, shape index: {}]   ;;  %s142_s2 = inlined_call_operand.vmem [shape: f32[1,32], index: 2, kind: input, shape index: {}]   ;;  %s143_s3 = inlined_call_operand.vmem [shape: f32[16,32], index: 3, kind: output, shape index: {}]  }
   0x1   :  { %v14_v0 = vld [vmem:[%s140_s0] sm:$0xff]  ;;  %v15_v2 = vld [vmem:[%s140_s0 + $0x8] sm:$0xff]  ;;  %89 = vrcp.f32 %v95_v4 }
   0x2   :  { %v17_v1 = vsel %vm16_vm0, %v14_v0, 0.0  ;;  %v20_v3 = vsel %vm16_vm0, %v15_v2, 0.0  ;;  %v87_v35 = vld [vmem:[%s141_s1] ss:$0 sm:$0xff] }
   0x3   :  { %18 = vadd.xlane.f32.xlu0 %v17_v1  ;;  %v88_v38 = vld [vmem:[%s142_s2] ss:$0 sm:$0xff] }
   0x7   :  { %v90_v5 = vpop.eup %89 }
   0x8   :  { %v24_v6 = vmul.f32 32.0, %v90_v5  ;;  %vm28_vm1 = vweird.f32 %v90_v5 }
   0xa   :  { %v25_v7 = vsub.f32 1.0, %v24_v6 }
   0xb   :  { %21 = vadd.xlane.f32.xlu0 %v20_v3 }
   0xc   :  { %v26_v8 = vmul.f32 %v90_v5, %v25_v7 }
   0xe   :  { %v27_v9 = vadd.f32 %v90_v5, %v26_v8 }
  0x10   :  { %v29_v10 = vsel %vm28_vm1, %v90_v5, %v27_v9 }
  0x76   :  { %v19_v11 = vpop.xlane.xlu0 %18 }
  0x77   :  { %v30_v12 = vmul.f32 %v29_v10, %v19_v11 }
  0x79   :  { %v32_v13 = vsub.f32 %v14_v0, %v30_v12 }
  0x7b   :  { %v34_v14 = vmul.f32 %v32_v13, %v32_v13 }
  0x7d   :  { %v36_v15 = vsel %vm16_vm0, %v34_v14, 0.0 }
  0x7e   :  { %37 = vadd.xlane.f32.xlu1 %v36_v15  ;;  %v22_v16 = vpop.xlane.xlu0 %21 }
  0x7f   :  { %v31_v17 = vmul.f32 %v29_v10, %v22_v16 }
  0x81   :  { %v33_v18 = vsub.f32 %v15_v2, %v31_v17 }
  0x83   :  { %v35_v19 = vmul.f32 %v33_v18, %v33_v18 }
  0x85   :  { %v39_v20 = vsel %vm16_vm0, %v35_v19, 0.0 }
  0x86   :  { %40 = vadd.xlane.f32.xlu1 %v39_v20 }
  0xf1   :  { %v38_v21 = vpop.xlane.xlu1 %37 }
  0xf2   :  { %v42_v22 = vmul.f32 %v38_v21, %v29_v10 }
  0xf4   :  { %v44_v23 = vadd.f32 1e-06, %v42_v22 }
  0xf6   :  { %91 = vrsqrt.f32 %v44_v23  ;;  %vm52_vm3 = vweird.f32 %v44_v23 }
  0xf9   :  { %v41_v24 = vpop.xlane.xlu1 %40 }
  0xfa   :  { %v43_v25 = vmul.f32 %v41_v24, %v29_v10 }
  0xfc   :  { %v92_v26 = vpop.eup %91  ;;  %v45_v27 = vadd.f32 1e-06, %v43_v25 }
  0xfd   :  { %v47_v28 = vmul.f32 %v92_v26, %v44_v23  ;;  %vm53_vm2 = vweird.f32 %v92_v26 }
  0xfe   :  { %93 = vrsqrt.f32 %v45_v27  ;;  %vm54_vm4 = vmor %vm52_vm3, %vm53_vm2  ;;  %vm62_vm6 = vweird.f32 %v45_v27 }
  0xff   :  { %v48_v29 = vmul.f32 %v92_v26, %v47_v28 }
 0x101   :  { %v49_v30 = vmul.f32 0.5, %v48_v29 }
 0x103   :  { %v50_v31 = vsub.f32 1.5, %v49_v30 }
 0x104   :  { %v94_v32 = vpop.eup %93 }
 0x105   :  { %v51_v33 = vmul.f32 %v92_v26, %v50_v31  ;;  %v57_v34 = vmul.f32 %v94_v32, %v45_v27  ;;  %vm63_vm5 = vweird.f32 %v94_v32 }
 0x106   :  { %vm64_vm7 = vmor %vm62_vm6, %vm63_vm5 }
 0x107   :  { %v55_v36 = vsel %vm54_vm4, %v92_v26, %v51_v33  ;;  %v58_v37 = vmul.f32 %v94_v32, %v57_v34 }
 0x108   :  { %v66_v39 = vmul.f32 %v55_v36, %v32_v13 }
 0x109   :  { %v59_v40 = vmul.f32 0.5, %v58_v37 }
 0x10a   :  { %v72_v41 = vmul.f32 %v87_v35, %v66_v39 }
 0x10b   :  { %v60_v42 = vsub.f32 1.5, %v59_v40 }
 0x10c   :  { %v78_v43 = vadd.f32 %v88_v38, %v72_v41 }
 0x10d   :  { %v61_v44 = vmul.f32 %v94_v32, %v60_v42 }
 0x10e   :  { %80 = vst.msk [vmem:[%s143_s3] sm:$0xff] %vm16_vm0, %v78_v43 }
 0x10f   :  { %v65_v45 = vsel %vm64_vm7, %v94_v32, %v61_v44 }
 0x110   :  { %v67_v46 = vmul.f32 %v65_v45, %v33_v18 }
 0x112   :  { %v73_v47 = vmul.f32 %v87_v35, %v67_v46 }
 0x114   :  { %v79_v48 = vadd.f32 %v88_v38, %v73_v47 }
 0x116   :  { %81 = vst.msk [vmem:[%s143_s3 + $0x8] sm:$0xff] %vm16_vm0, %v79_v48 }

// kernel: transformer_forward.43
= control target key start
LH: loop header
LB: loop body
LE: loop exit
PB: predicated region body
PF: predicated region fallthrough
CT: control target
= control target key end

     0   :  { %vm16_vm0 = vcmask 785408   ;;  %v98_v1 = vmov 0.0   ;;  %vm44_vm1 = vcmask 261120   ;;  %vm74_vm2 = vcmask 781312   ;;  %s133_s1 = inlined_call_operand.vmem [shape: bf16[32,96], index: 1, kind: input, shape index: {}]   ;;  %s134_s0 = inlined_call_operand.vmem [shape: bf16[16,32], index: 0, kind: input, shape index: {}]   ;;  %s135_s2 = inlined_call_operand.vmem [shape: bf16[16,96], index: 2, kind: output, shape index: {}]  }
   0x1   :  { %v96_v0 = vld [vmem:[%s133_s1 + $0x8] sm:$0xff]  ;;  %17 = vst.msk [vmem:[#allocation2] sm:$0xff] %vm16_vm0, %v98_v1  ;;  %v95_v2 = vld [vmem:[%s133_s1] sm:$0xff] }
   0x2   :  { %18 = vst.msk [vmem:[#allocation2 + $0x8] sm:$0xff] %vm16_vm0, %v98_v1  ;;  %54 = vmatpush.bf16.msra.mxu0 %v96_v0  ;;  %v94_v3 = vld [vmem:[%s134_s0] sm:$0xff] }
   0x6   :  { %55 = vmatpush.bf16.msra.mxu0 %v95_v2 }
   0x8   :  { %v19_v4 = vld [vmem:[#allocation2] sm:$0xff] }
   0x9   :  { %93 = vmatmul.msk.bf16.vlgmr.msra.gmra.mxu0 %vm44_vm1, %v94_v3  ;;  %v20_v7 = vld [vmem:[#allocation2 + $0x8] sm:$0xff] }
  0x86   :  { %v57_v5 = vpop.f32.mrf.mxu0 }
  0x87   :  { %v62_v6 = vadd.f32 %v57_v5, %v19_v4 }
  0x89   :  { %65 = vst.msk [vmem:[#allocation2] sm:$0xff] %vm16_vm0, %v62_v6 }
  0x8e   :  { %v59_v8 = vpop.f32.mrf.mxu0 }
  0x8f   :  { %v63_v9 = vadd.f32 %v59_v8, %v20_v7 }
  0x90   :  { %v70_v10 = vld [vmem:[#allocation2] sm:$0xff] }
  0x91   :  { %v72_v11 = vpack.c.bf16 %v70_v10, %v70_v10  ;;  %66 = vst.msk [vmem:[#allocation2 + $0x8] sm:$0xff] %vm16_vm0, %v63_v9 }
  0x93   :  { %75 = vst.msk [vmem:[%s135_s2] sm:$0xf] %vm74_vm2, %v72_v11 }
  0x98   :  { %v71_v12 = vld [vmem:[#allocation2 + $0x8] sm:$0xff] }
  0x99   :  { %v73_v13 = vpack.c.bf16 %v71_v12, %v71_v12 }
  0x9b   :  { %76 = vst.msk [vmem:[%s135_s2 + $0x4] sm:$0xf] %vm74_vm2, %v73_v13 }

// kernel: transformer_forward.44
= control target key start
LH: loop header
LB: loop body
LE: loop exit
PB: predicated region body
PF: predicated region fallthrough
CT: control target
= control target key end

     0   :  { %s688_s15 = smov 0   ;;  %s744_s0 = inlined_call_operand.vmem [shape: bf16[2,4,8,8], index: 0, kind: input, shape index: {}]   ;;  %s745_s1 = inlined_call_operand.vmem [shape: bf16[2,4,8,8], index: 1, kind: input, shape index: {}]   ;;  %s746_s2 = inlined_call_operand.vmem [shape: bf16[2,4,8,8], index: 2, kind: input, shape index: {}]   ;;  %s747_s3 = inlined_call_operand.vmem [shape: f32[2,1,8], index: 3, kind: input, shape index: {}]   ;;  %s748_s4 = inlined_call_operand.vmem [shape: bf16[2,4,8,8], index: 4, kind: output, shape index: {}]  }
   0x1 LB: > { %s593_s16 = sadd.s32 4294967295, %s660_s15   ;;  %p597_p0 = scmp.ge.s32.totalorder %s660_s15, 1  ;;  %s660_s15 = sphi %s688_s15, %s14_s15  }
   0x2   : > { %p190_p1 = scmp.lt.s32.totalorder %s660_s15, 3 }
   0x4   : > { %p191_p2 = pnand %p597_p0, %p190_p1 }
   0x5   : > { %p229_p3 = scmp.lt.s32.totalorder (!%p191_p2), %s593_s16, 1 }
   0x6   : > { %194 = sbr.rel (%p191_p2) target bundleno = 560 (0x230), region = 36 }
   0xb   : > { %s750_s16 = smov (!%p229_p3, %s593_s16), 1  ;;  %vm278_vm0 = vcmask 64512   ;;  %v356_v23 = vlaneseq  ;;  %v662_v24 = vmov 0   ;;  %vm422_vm5 = vcmask 1043456  }
   0xc   : > { %s699_s17 = sshll.u32 %s750_s16, 4  ;;  %s246_s26 = scalar_lea.vmem %s747_s3, %s750_s16  ;;  %vm500_vm6 = vcmask 60416  }
   0xd   : > { %s238_s20 = scalar_lea.vmem %s745_s1, %s699_s17  ;;  %s233_s23 = scalar_lea.vmem %s744_s0, %s699_s17  ;;  %v277_v22 = vld [vmem:[%s246_s26] sm:$0x1]  ;;  %v357_v26 = vshrl.u32 %v356_v23, 7  ;;  %v359_v27 = vand.u32 127, %v356_v23 }
   0xe   : > { %v269_v0 = vld [vmem:[%s238_s20] sm:$0xf]  ;;  %v271_v1 = vld [vmem:[%s238_s20 + $0x8] sm:$0xf]  ;;  %v272_v2 = vld [vmem:[%s238_s20 + $0xc] sm:$0xf]  ;;  %s243_s29 = scalar_lea.vmem %s746_s2, %s699_s17  ;;  %s251_s6 = scalar_lea.vmem %s748_s4, %s699_s17 }
   0xf   : > { %v283_v3 = vsel %vm278_vm0, %v269_v0, 0  ;;  %v321_v4 = vsel %vm278_vm0, %v271_v1, 0  ;;  %v340_v5 = vsel %vm278_vm0, %v272_v2, 0  ;;  %v621_v6 = vld [vmem:[%s233_s23] sm:$0xff]   ;;  %v628_v7 = vld [vmem:[%s233_s23 + $0x8] sm:$0xff]   ;;  %vm355_vm1 = vcmp.gt.f32.partialorder %v277_v22, 0.0 }
  0x10   : > { %292 = vmatpush.bf16.xpose.msra.mxu0 %v283_v3  ;;  %330 = vmatpush.bf16.xpose.msra.mxu2 %v321_v4  ;;  %v622_v8 = vunpack.c.l.bf16 %v621_v6  ;;  %v626_v9 = vunpack.c.l.bf16 %v628_v7  ;;  %v627_v10 = vunpack.c.h.bf16 %v628_v7  ;;  %v270_v11 = vld [vmem:[%s238_s20 + $0x4] sm:$0xf]  ;;  %v623_v12 = vunpack.c.h.bf16 %v621_v6  ;;  %v273_v1 = vld [vmem:[%s243_s29] sm:$0xf]  ;;  %v275_v3 = vld [vmem:[%s243_s29 + $0x8] sm:$0xf] }
  0x11   : > { %349 = vmatpush.bf16.xpose.msra.mxu3 %v340_v5  ;;  %v302_v13 = vsel %vm278_vm0, %v270_v11, 0  ;;  %v361_v25 = vsel %vm355_vm1, 1, %v662_v24  ;;  %vm360_vm2 = vcmp.le.s32.totalorder %v359_v27, %v357_v26  ;;  %v424_v2 = vsel %vm422_vm5, %v273_v1, 0  ;;  %v274_v5 = vld [vmem:[%s243_s29 + $0x4] sm:$0xf] }
  0x12   : > { %v261_v14 = vmul.f32 0.35351563, %v622_v8  ;;  %v263_v15 = vmul.f32 0.35351563, %v626_v9  ;;  %v264_v16 = vmul.f32 0.35351563, %v627_v10  ;;  %311 = vmatpush.bf16.xpose.msra.mxu1 %v302_v13  ;;  %v262_v17 = vmul.f32 0.35351563, %v623_v12  ;;  %v276_v7 = vld [vmem:[%s243_s29 + $0xc] sm:$0xf] }
  0x13   : > { %v362_v28 = vperm.slane %v361_v25, 0  ;;  %v462_v4 = vsel %vm422_vm5, %v275_v3, 0  ;;  %v443_v6 = vsel %vm422_vm5, %v274_v5, 0  ;;  %v481_v8 = vsel %vm422_vm5, %v276_v7, 0 }
  0x14   : > { %v265_v18 = vpack.c.bf16 %v261_v14, %v261_v14  ;;  %v267_v19 = vpack.c.bf16 %v263_v15, %v263_v15  ;;  %v268_v20 = vpack.c.bf16 %v264_v16, %v264_v16  ;;  %v266_v21 = vpack.c.bf16 %v262_v17, %v262_v17 }
  0x15   : > { %vm363_vm3 = vcmp.eq.s32.totalorder %v362_v28, 1 }
  0x16   : > { %vm364_vm4 = vmand %vm363_vm3, %vm360_vm2 }
  0x17   : > { %606 = vmatmul.msk.bf16.vlgmr.msra.gmra.mxu0 %vm278_vm0, %v265_v18  ;;  %608 = vmatmul.msk.bf16.vlgmr.msra.gmra.mxu2 %vm278_vm0, %v267_v19 }
  0x18   : > { %609 = vmatmul.msk.bf16.vlgmr.msra.gmra.mxu3 %vm278_vm0, %v268_v20  ;;  %433 = vmatpush.bf16.msrb.mxu0 %v424_v2 }
  0x19   : > { %607 = vmatmul.msk.bf16.vlgmr.msra.gmra.mxu1 %vm278_vm0, %v266_v21  ;;  %471 = vmatpush.bf16.msrb.mxu2 %v462_v4 }
  0x1a   : > { %452 = vmatpush.bf16.msrb.mxu1 %v443_v6  ;;  %490 = vmatpush.bf16.msrb.mxu3 %v481_v8 }
  0x94   : > { %v294_v29 = vpop.f32.mrf.mxu0 }
  0x95   : > { %v367_v30 = vsel %vm364_vm4, %v294_v29, -1e+09 }
  0x96   : > { %v371_v31 = vsel %vm278_vm0, %v367_v30, -inf  ;;  %v313_v32 = vpop.f32.mrf.mxu1 }
  0x97   : > { %372 = vmax.xlane.f32.xlu1 %v371_v31  ;;  %v368_v33 = vsel %vm364_vm4, %v313_v32, -1e+09 }
  0x98   : > { %v374_v38 = vsel %vm278_vm0, %v368_v33, -inf }
  0x9a   : > { %v332_v34 = vpop.f32.mrf.mxu2 }
  0x9b   : > { %v369_v35 = vsel %vm364_vm4, %v332_v34, -1e+09  ;;  %v351_v36 = vpop.f32.mrf.mxu3 }
  0x9c   : > { %v377_v37 = vsel %vm278_vm0, %v369_v35, -inf  ;;  %v296_v39 = vpop.f32.mrf.mxu0  ;;  %v370_v41 = vsel %vm364_vm4, %v351_v36, -1e+09 }
  0x9d   : > { %378 = vmax.xlane.f32.xlu0 %v377_v37  ;;  %v380_v43 = vsel %vm278_vm0, %v370_v41, -inf }
  0x9e   : > { %v315_v40 = vpop.f32.mrf.mxu1 }
  0x9f   : > { %375 = vmax.xlane.f32.xlu1 %v374_v38 }
  0xa2   : > { %v334_v42 = vpop.f32.mrf.mxu2 }
  0xa3   : > { %v353_v44 = vpop.f32.mrf.mxu3 }
  0xa5   : > { %381 = vmax.xlane.f32.xlu0 %v380_v43 }
 0x10a   : > { %v373_v45 = vpop.xlane.xlu1 %372 }
 0x10b   : > { %v383_v46 = vsub.f32 %v367_v30, %v373_v45 }
 0x10d   : > { %v387_v47 = vmul.f32 1.442695, %v383_v46 }
 0x10f   : > { %638 = vpow2.f32 %v387_v47 }
 0x110   : > { %v379_v48 = vpop.xlane.xlu0 %378 }
 0x111   : > { %v385_v49 = vsub.f32 %v369_v35, %v379_v48 }
 0x112   : > { %v376_v50 = vpop.xlane.xlu1 %375 }
 0x113   : > { %v391_v51 = vmul.f32 1.442695, %v385_v49  ;;  %v384_v52 = vsub.f32 %v368_v33, %v376_v50 }
 0x115   : > { %v639_v53 = vpop.eup %638  ;;  %640 = vpow2.f32 %v391_v51  ;;  %v389_v54 = vmul.f32 1.442695, %v384_v52 }
 0x116   : > { %v395_v55 = vsel %vm278_vm0, %v639_v53, 0.0 }
 0x117   : > { %642 = vpow2.f32 %v389_v54  ;;  %396 = vadd.xlane.f32.xlu0 %v395_v55 }
 0x118   : > { %v382_v56 = vpop.xlane.xlu0 %381 }
 0x119   : > { %v386_v57 = vsub.f32 %v370_v41, %v382_v56 }
 0x11b   : > { %v641_v58 = vpop.eup %640  ;;  %v393_v59 = vmul.f32 1.442695, %v386_v57 }
 0x11c   : > { %v401_v60 = vsel %vm278_vm0, %v641_v58, 0.0 }
 0x11d   : > { %v643_v61 = vpop.eup %642  ;;  %644 = vpow2.f32 %v393_v59  ;;  %402 = vadd.xlane.f32.xlu2 %v401_v60 }
 0x11e   : > { %v398_v62 = vsel %vm278_vm0, %v643_v61, 0.0 }
 0x11f   : > { %399 = vadd.xlane.f32.xlu1 %v398_v62 }
 0x123   : > { %v645_v63 = vpop.eup %644 }
 0x124   : > { %v404_v0 = vsel %vm278_vm0, %v645_v63, 0.0 }
 0x125   : > { %405 = vadd.xlane.f32.xlu2 %v404_v0 }
 0x18a   : > { %v397_v9 = vpop.xlane.xlu0 %396 }
 0x18b   : > { %646 = vrcp.f32 %v397_v9 }
 0x190   : > { %v403_v10 = vpop.xlane.xlu2 %402 }
 0x191   : > { %v647_v11 = vpop.eup %646  ;;  %648 = vrcp.f32 %v403_v10 }
 0x192   : > { %v411_v12 = vmul.f32 %v647_v11, %v639_v53  ;;  %v400_v13 = vpop.xlane.xlu1 %399 }
 0x193   : > { %650 = vrcp.f32 %v400_v13 }
 0x194   : > { %v415_v14 = vpack.c.bf16 %v411_v12, %v411_v12 }
 0x196   : > { %610 = vmatmul.msk.bf16.vlgmr.msrb.gmra.mxu0 %vm278_vm0, %v415_v14 }
 0x197   : > { %v649_v15 = vpop.eup %648 }
 0x198   : > { %v413_v16 = vmul.f32 %v649_v15, %v641_v58  ;;  %v406_v17 = vpop.xlane.xlu2 %405 }
 0x199   : > { %v651_v18 = vpop.eup %650  ;;  %652 = vrcp.f32 %v406_v17 }
 0x19a   : > { %v412_v19 = vmul.f32 %v651_v18, %v643_v61  ;;  %v417_v20 = vpack.c.bf16 %v413_v16, %v413_v16 }
 0x19c   : > { %v416_v21 = vpack.c.bf16 %v412_v19, %v412_v19  ;;  %612 = vmatmul.msk.bf16.vlgmr.msrb.gmra.mxu2 %vm278_vm0, %v417_v20 }
 0x19e   : > { %611 = vmatmul.msk.bf16.vlgmr.msrb.gmra.mxu1 %vm278_vm0, %v416_v21 }
 0x19f   : > { %v653_v22 = vpop.eup %652 }
 0x1a0   : > { %v414_v23 = vmul.f32 %v653_v22, %v645_v63 }
 0x1a2   : > { %v418_v24 = vpack.c.bf16 %v414_v23, %v414_v23 }
 0x1a4   : > { %613 = vmatmul.msk.bf16.vlgmr.msrb.gmra.mxu3 %vm278_vm0, %v418_v24 }
 0x213   : > { %v435_v25 = vpop.f32.mrf.mxu0 }
 0x214   : > { %v496_v26 = vpack.c.bf16 %v435_v25, %v435_v25 }
 0x216   : > { %501 = vst.msk [vmem:[%s251_s6] sm:$0xf] %vm500_vm6, %v496_v26 }
 0x21b   : > { %v437_v27 = vpop.f32.mrf.mxu0  ;;  %v454_v28 = vpop.f32.mrf.mxu1 }
 0x21c   : > { %v497_v29 = vpack.c.bf16 %v454_v28, %v454_v28 }
 0x21e   : > { %502 = vst.msk [vmem:[%s251_s6 + $0x4] sm:$0xf] %vm500_vm6, %v497_v29 }
 0x21f   : > { %v473_v30 = vpop.f32.mrf.mxu2 }
 0x220   : > { %v498_v31 = vpack.c.bf16 %v473_v30, %v473_v30 }
 0x222   : > { %503 = vst.msk [vmem:[%s251_s6 + $0x8] sm:$0xf] %vm500_vm6, %v498_v31 }
 0x223   : > { %v456_v32 = vpop.f32.mrf.mxu1 }
 0x227   : > { %v475_v33 = vpop.f32.mrf.mxu2  ;;  %v492_v34 = vpop.f32.mrf.mxu3 }
 0x228   : > { %v499_v35 = vpack.c.bf16 %v492_v34, %v492_v34 }
 0x22a   : > { %504 = vst.msk [vmem:[%s251_s6 + $0xc] sm:$0xf] %vm500_vm6, %v499_v35 }
 0x22f   : > { %v494_v36 = vpop.f32.mrf.mxu3 }
 0x230 PF: > { %s14_s15 = sadd.s32 1, %s660_s15  }
 0x231   : > { %p11_p4 = scmp.ge.s32.totalorder %s14_s15, 4  }
 0x233   :  { %13 = sbr.rel (!%p11_p4) target bundleno = 1 (0x1), region = 75 }

// kernel: transformer_forward.46
= control target key start
LH: loop header
LB: loop body
LE: loop exit
PB: predicated region body
PF: predicated region fallthrough
CT: control target
= control target key end

     0   :  { %vm16_vm0 = vcmask 261120   ;;  %v97_v1 = vmov 0.0   ;;  %vm73_vm1 = vcmask 257024   ;;  %s133_s1 = inlined_call_operand.vmem [shape: bf16[32,32], index: 1, kind: input, shape index: {}]   ;;  %s134_s0 = inlined_call_operand.vmem [shape: bf16[16,32], index: 0, kind: input, shape index: {}]   ;;  %s135_s2 = inlined_call_operand.vmem [shape: bf16[16,32], index: 2, kind: output, shape index: {}]  }
   0x1   :  { %v95_v0 = vld [vmem:[%s133_s1 + $0x8] sm:$0xff]  ;;  %17 = vst.msk [vmem:[#allocation2] sm:$0xff] %vm16_vm0, %v97_v1  ;;  %v94_v2 = vld [vmem:[%s133_s1] sm:$0xff] }
   0x2   :  { %18 = vst.msk [vmem:[#allocation2 + $0x8] sm:$0xff] %vm16_vm0, %v97_v1  ;;  %54 = vmatpush.bf16.msra.mxu0 %v95_v0  ;;  %v93_v3 = vld [vmem:[%s134_s0] sm:$0xff] }
   0x6   :  { %55 = vmatpush.bf16.msra.mxu0 %v94_v2 }
   0x8   :  { %v19_v4 = vld [vmem:[#allocation2] sm:$0xff] }
   0x9   :  { %92 = vmatmul.msk.bf16.vlgmr.msra.gmra.mxu0 %vm16_vm0, %v93_v3  ;;  %v20_v7 = vld [vmem:[#allocation2 + $0x8] sm:$0xff] }
  0x86   :  { %v57_v5 = vpop.f32.mrf.mxu0 }
  0x87   :  { %v62_v6 = vadd.f32 %v57_v5, %v19_v4 }
  0x89   :  { %64 = vst.msk [vmem:[#allocation2] sm:$0xff] %vm16_vm0, %v62_v6 }
  0x8e   :  { %v59_v8 = vpop.f32.mrf.mxu0 }
  0x8f   :  { %v63_v9 = vadd.f32 %v59_v8, %v20_v7 }
  0x90   :  { %v69_v10 = vld [vmem:[#allocation2] sm:$0xff] }
  0x91   :  { %v71_v11 = vpack.c.bf16 %v69_v10, %v69_v10  ;;  %65 = vst.msk [vmem:[#allocation2 + $0x8] sm:$0xff] %vm16_vm0, %v63_v9 }
  0x93   :  { %74 = vst.msk [vmem:[%s135_s2] sm:$0xf] %vm73_vm1, %v71_v11 }
  0x98   :  { %v70_v12 = vld [vmem:[#allocation2 + $0x8] sm:$0xff] }
  0x99   :  { %v72_v13 = vpack.c.bf16 %v70_v12, %v70_v12 }
  0x9b   :  { %75 = vst.msk [vmem:[%s135_s2 + $0x4] sm:$0xf] %vm73_vm1, %v72_v13 }

// kernel: transformer_forward.35
= control target key start
LH: loop header
LB: loop body
LE: loop exit
PB: predicated region body
PF: predicated region fallthrough
CT: control target
= control target key end

     0   :  { %vm19_vm0 = vcmask 523264   ;;  %v110_v1 = vmov 0.0   ;;  %vm47_vm1 = vcmask 261120   ;;  %vm85_vm2 = vcmask 519168   ;;  %s153_s1 = inlined_call_operand.vmem [shape: bf16[32,64], index: 1, kind: input, shape index: {}]   ;;  %s154_s2 = inlined_call_operand.vmem [shape: f32[1,64], index: 2, kind: input, shape index: {}]   ;;  %s155_s0 = inlined_call_operand.vmem [shape: bf16[16,32], index: 0, kind: input, shape index: {}]   ;;  %s156_s3 = inlined_call_operand.vmem [shape: bf16[16,64], index: 3, kind: output, shape index: {}]  }
   0x1   :  { %v107_v0 = vld [vmem:[%s153_s1 + $0x8] sm:$0xff]  ;;  %20 = vst.msk [vmem:[#allocation2] sm:$0xff] %vm19_vm0, %v110_v1  ;;  %v106_v2 = vld [vmem:[%s153_s1] sm:$0xff] }
   0x2   :  { %21 = vst.msk [vmem:[#allocation2 + $0x8] sm:$0xff] %vm19_vm0, %v110_v1  ;;  %57 = vmatpush.bf16.msra.mxu0 %v107_v0  ;;  %v105_v3 = vld [vmem:[%s155_s0] sm:$0xff] }
   0x3   :  { %v109_v8 = vld [vmem:[%s154_s2] ss:$0 sm:$0xff] }
   0x6   :  { %58 = vmatpush.bf16.msra.mxu0 %v106_v2 }
   0x8   :  { %v22_v4 = vld [vmem:[#allocation2] sm:$0xff] }
   0x9   :  { %104 = vmatmul.msk.bf16.vlgmr.msra.gmra.mxu0 %vm47_vm1, %v105_v3  ;;  %v23_v7 = vld [vmem:[#allocation2 + $0x8] sm:$0xff] }
  0x86   :  { %v60_v5 = vpop.f32.mrf.mxu0 }
  0x87   :  { %v65_v6 = vadd.f32 %v60_v5, %v22_v4 }
  0x89   :  { %68 = vst.msk [vmem:[#allocation2] sm:$0xff] %vm19_vm0, %v65_v6 }
  0x8e   :  { %v62_v9 = vpop.f32.mrf.mxu0 }
  0x8f   :  { %v66_v10 = vadd.f32 %v62_v9, %v23_v7 }
  0x90   :  { %v73_v11 = vld [vmem:[#allocation2] sm:$0xff] }
  0x91   :  { %v79_v12 = vadd.f32 %v109_v8, %v73_v11  ;;  %69 = vst.msk [vmem:[#allocation2 + $0x8] sm:$0xff] %vm19_vm0, %v66_v10 }
  0x93   :  { %v81_v13 = vmax.f32 %v79_v12, 0.0 }
  0x95   :  { %v83_v14 = vpack.c.bf16 %v81_v13, %v81_v13 }
  0x97   :  { %86 = vst.msk [vmem:[%s156_s3] sm:$0xf] %vm85_vm2, %v83_v14 }
  0x98   :  { %v74_v15 = vld [vmem:[#allocation2 + $0x8] sm:$0xff] }
  0x99   :  { %v80_v16 = vadd.f32 %v109_v8, %v74_v15 }
  0x9b   :  { %v82_v17 = vmax.f32 %v80_v16, 0.0 }
  0x9d   :  { %v84_v18 = vpack.c.bf16 %v82_v17, %v82_v17 }
  0x9f   :  { %87 = vst.msk [vmem:[%s156_s3 + $0x4] sm:$0xf] %vm85_vm2, %v84_v18 }

// kernel: transformer_forward.33
= control target key start
LH: loop header
LB: loop body
LE: loop exit
PB: predicated region body
PF: predicated region fallthrough
CT: control target
= control target key end

     0   :  { %s680_s15 = smov 0   ;;  %s736_s0 = inlined_call_operand.vmem [shape: bf16[2,4,8,8], index: 0, kind: input, shape index: {}]   ;;  %s737_s1 = inlined_call_operand.vmem [shape: bf16[2,4,8,8], index: 1, kind: input, shape index: {}]   ;;  %s738_s2 = inlined_call_operand.vmem [shape: bf16[2,4,8,8], index: 2, kind: input, shape index: {}]   ;;  %s739_s3 = inlined_call_operand.vmem [shape: f32[2,1,8], index: 3, kind: input, shape index: {}]   ;;  %s740_s4 = inlined_call_operand.vmem [shape: bf16[2,4,8,8], index: 4, kind: output, shape index: {}]  }
   0x1 LB: > { %s585_s16 = sadd.s32 4294967295, %s652_s15   ;;  %p589_p0 = scmp.ge.s32.totalorder %s652_s15, 1  ;;  %s652_s15 = sphi %s680_s15, %s14_s15  }
   0x2   : > { %p190_p1 = scmp.lt.s32.totalorder %s652_s15, 3 }
   0x4   : > { %p191_p2 = pnand %p589_p0, %p190_p1 }
   0x5   : > { %p229_p3 = scmp.lt.s32.totalorder (!%p191_p2), %s585_s16, 1 }
   0x6   : > { %194 = sbr.rel (%p191_p2) target bundleno = 560 (0x230), region = 36 }
   0xb   : > { %s742_s16 = smov (!%p229_p3, %s585_s16), 1  ;;  %vm278_vm0 = vcmask 64512   ;;  %v654_v23 = vmov 0   ;;  %vm414_vm3 = vcmask 1043456   ;;  %vm492_vm4 = vcmask 60416  }
   0xc   : > { %s691_s17 = sshll.u32 %s742_s16, 4  ;;  %s246_s26 = scalar_lea.vmem %s739_s3, %s742_s16 }
   0xd   : > { %s238_s20 = scalar_lea.vmem %s737_s1, %s691_s17  ;;  %s233_s23 = scalar_lea.vmem %s736_s0, %s691_s17  ;;  %v277_v22 = vld [vmem:[%s246_s26] sm:$0x1] }
   0xe   : > { %v269_v0 = vld [vmem:[%s238_s20] sm:$0xf]  ;;  %v271_v1 = vld [vmem:[%s238_s20 + $0x8] sm:$0xf]  ;;  %v272_v2 = vld [vmem:[%s238_s20 + $0xc] sm:$0xf]  ;;  %s243_s29 = scalar_lea.vmem %s738_s2, %s691_s17  ;;  %s251_s6 = scalar_lea.vmem %s740_s4, %s691_s17 }
   0xf   : > { %v283_v3 = vsel %vm278_vm0, %v269_v0, 0  ;;  %v321_v4 = vsel %vm278_vm0, %v271_v1, 0  ;;  %v340_v5 = vsel %vm278_vm0, %v272_v2, 0  ;;  %v613_v6 = vld [vmem:[%s233_s23] sm:$0xff]   ;;  %v620_v7 = vld [vmem:[%s233_s23 + $0x8] sm:$0xff]   ;;  %vm355_vm1 = vcmp.gt.f32.partialorder %v277_v22, 0.0 }
  0x10   : > { %292 = vmatpush.bf16.xpose.msra.mxu0 %v283_v3  ;;  %330 = vmatpush.bf16.xpose.msra.mxu2 %v321_v4  ;;  %v614_v8 = vunpack.c.l.bf16 %v613_v6  ;;  %v618_v9 = vunpack.c.l.bf16 %v620_v7  ;;  %v619_v10 = vunpack.c.h.bf16 %v620_v7  ;;  %v270_v11 = vld [vmem:[%s238_s20 + $0x4] sm:$0xf]  ;;  %v615_v12 = vunpack.c.h.bf16 %v613_v6  ;;  %v273_v62 = vld [vmem:[%s243_s29] sm:$0xf]  ;;  %v275_v0 = vld [vmem:[%s243_s29 + $0x8] sm:$0xf] }
  0x11   : > { %349 = vmatpush.bf16.xpose.msra.mxu3 %v340_v5  ;;  %v302_v13 = vsel %vm278_vm0, %v270_v11, 0  ;;  %v356_v24 = vsel %vm355_vm1, 1, %v654_v23  ;;  %v416_v63 = vsel %vm414_vm3, %v273_v62, 0  ;;  %v454_v1 = vsel %vm414_vm3, %v275_v0, 0  ;;  %v274_v2 = vld [vmem:[%s243_s29 + $0x4] sm:$0xf] }
  0x12   : > { %v261_v14 = vmul.f32 0.35351563, %v614_v8  ;;  %v263_v15 = vmul.f32 0.35351563, %v618_v9  ;;  %v264_v16 = vmul.f32 0.35351563, %v619_v10  ;;  %311 = vmatpush.bf16.xpose.msra.mxu1 %v302_v13  ;;  %v262_v17 = vmul.f32 0.35351563, %v615_v12  ;;  %v276_v4 = vld [vmem:[%s243_s29 + $0xc] sm:$0xf] }
  0x13   : > { %v357_v25 = vperm.slane %v356_v24, 0  ;;  %v435_v3 = vsel %vm414_vm3, %v274_v2, 0  ;;  %v473_v5 = vsel %vm414_vm3, %v276_v4, 0 }
  0x14   : > { %v265_v18 = vpack.c.bf16 %v261_v14, %v261_v14  ;;  %v267_v19 = vpack.c.bf16 %v263_v15, %v263_v15  ;;  %v268_v20 = vpack.c.bf16 %v264_v16, %v264_v16  ;;  %v266_v21 = vpack.c.bf16 %v262_v17, %v262_v17 }
  0x15   : > { %vm358_vm2 = vcmp.eq.s32.totalorder %v357_v25, 1 }
  0x17   : > { %598 = vmatmul.msk.bf16.vlgmr.msra.gmra.mxu0 %vm278_vm0, %v265_v18  ;;  %600 = vmatmul.msk.bf16.vlgmr.msra.gmra.mxu2 %vm278_vm0, %v267_v19 }
  0x18   : > { %601 = vmatmul.msk.bf16.vlgmr.msra.gmra.mxu3 %vm278_vm0, %v268_v20  ;;  %425 = vmatpush.bf16.msrb.mxu0 %v416_v63 }
  0x19   : > { %599 = vmatmul.msk.bf16.vlgmr.msra.gmra.mxu1 %vm278_vm0, %v266_v21  ;;  %463 = vmatpush.bf16.msrb.mxu2 %v454_v1 }
  0x1a   : > { %444 = vmatpush.bf16.msrb.mxu1 %v435_v3  ;;  %482 = vmatpush.bf16.msrb.mxu3 %v473_v5 }
  0x94   : > { %v294_v26 = vpop.f32.mrf.mxu0 }
  0x95   : > { %v359_v27 = vsel %vm358_vm2, %v294_v26, -1e+09 }
  0x96   : > { %v363_v28 = vsel %vm278_vm0, %v359_v27, -inf  ;;  %v313_v29 = vpop.f32.mrf.mxu1 }
  0x97   : > { %364 = vmax.xlane.f32.xlu1 %v363_v28  ;;  %v360_v30 = vsel %vm358_vm2, %v313_v29, -1e+09 }
  0x98   : > { %v366_v35 = vsel %vm278_vm0, %v360_v30, -inf }
  0x9a   : > { %v332_v31 = vpop.f32.mrf.mxu2 }
  0x9b   : > { %v361_v32 = vsel %vm358_vm2, %v332_v31, -1e+09  ;;  %v351_v33 = vpop.f32.mrf.mxu3 }
  0x9c   : > { %v369_v34 = vsel %vm278_vm0, %v361_v32, -inf  ;;  %v296_v36 = vpop.f32.mrf.mxu0  ;;  %v362_v38 = vsel %vm358_vm2, %v351_v33, -1e+09 }
  0x9d   : > { %370 = vmax.xlane.f32.xlu0 %v369_v34  ;;  %v372_v40 = vsel %vm278_vm0, %v362_v38, -inf }
  0x9e   : > { %v315_v37 = vpop.f32.mrf.mxu1 }
  0x9f   : > { %367 = vmax.xlane.f32.xlu1 %v366_v35 }
  0xa2   : > { %v334_v39 = vpop.f32.mrf.mxu2 }
  0xa3   : > { %v353_v41 = vpop.f32.mrf.mxu3 }
  0xa5   : > { %373 = vmax.xlane.f32.xlu0 %v372_v40 }
 0x10a   : > { %v365_v42 = vpop.xlane.xlu1 %364 }
 0x10b   : > { %v375_v43 = vsub.f32 %v359_v27, %v365_v42 }
 0x10d   : > { %v379_v44 = vmul.f32 1.442695, %v375_v43 }
 0x10f   : > { %630 = vpow2.f32 %v379_v44 }
 0x110   : > { %v371_v45 = vpop.xlane.xlu0 %370 }
 0x111   : > { %v377_v46 = vsub.f32 %v361_v32, %v371_v45 }
 0x112   : > { %v368_v47 = vpop.xlane.xlu1 %367 }
 0x113   : > { %v383_v48 = vmul.f32 1.442695, %v377_v46  ;;  %v376_v49 = vsub.f32 %v360_v30, %v368_v47 }
 0x115   : > { %v631_v50 = vpop.eup %630  ;;  %632 = vpow2.f32 %v383_v48  ;;  %v381_v51 = vmul.f32 1.442695, %v376_v49 }
 0x116   : > { %v387_v52 = vsel %vm278_vm0, %v631_v50, 0.0 }
 0x117   : > { %634 = vpow2.f32 %v381_v51  ;;  %388 = vadd.xlane.f32.xlu0 %v387_v52 }
 0x118   : > { %v374_v53 = vpop.xlane.xlu0 %373 }
 0x119   : > { %v378_v54 = vsub.f32 %v362_v38, %v374_v53 }
 0x11b   : > { %v633_v55 = vpop.eup %632  ;;  %v385_v56 = vmul.f32 1.442695, %v378_v54 }
 0x11c   : > { %v393_v57 = vsel %vm278_vm0, %v633_v55, 0.0 }
 0x11d   : > { %v635_v58 = vpop.eup %634  ;;  %636 = vpow2.f32 %v385_v56  ;;  %394 = vadd.xlane.f32.xlu2 %v393_v57 }
 0x11e   : > { %v390_v59 = vsel %vm278_vm0, %v635_v58, 0.0 }
 0x11f   : > { %391 = vadd.xlane.f32.xlu1 %v390_v59 }
 0x123   : > { %v637_v60 = vpop.eup %636 }
 0x124   : > { %v396_v61 = vsel %vm278_vm0, %v637_v60, 0.0 }
 0x125   : > { %397 = vadd.xlane.f32.xlu2 %v396_v61 }
 0x18a   : > { %v389_v6 = vpop.xlane.xlu0 %388 }
 0x18b   : > { %638 = vrcp.f32 %v389_v6 }
 0x190   : > { %v395_v7 = vpop.xlane.xlu2 %394 }
 0x191   : > { %v639_v8 = vpop.eup %638  ;;  %640 = vrcp.f32 %v395_v7 }
 0x192   : > { %v403_v9 = vmul.f32 %v639_v8, %v631_v50  ;;  %v392_v10 = vpop.xlane.xlu1 %391 }
 0x193   : > { %642 = vrcp.f32 %v392_v10 }
 0x194   : > { %v407_v11 = vpack.c.bf16 %v403_v9, %v403_v9 }
 0x196   : > { %602 = vmatmul.msk.bf16.vlgmr.msrb.gmra.mxu0 %vm278_vm0, %v407_v11 }
 0x197   : > { %v641_v12 = vpop.eup %640 }
 0x198   : > { %v405_v13 = vmul.f32 %v641_v12, %v633_v55  ;;  %v398_v14 = vpop.xlane.xlu2 %397 }
 0x199   : > { %v643_v15 = vpop.eup %642  ;;  %644 = vrcp.f32 %v398_v14 }
 0x19a   : > { %v404_v16 = vmul.f32 %v643_v15, %v635_v58  ;;  %v409_v17 = vpack.c.bf16 %v405_v13, %v405_v13 }
 0x19c   : > { %v408_v18 = vpack.c.bf16 %v404_v16, %v404_v16  ;;  %604 = vmatmul.msk.bf16.vlgmr.msrb.gmra.mxu2 %vm278_vm0, %v409_v17 }
 0x19e   : > { %603 = vmatmul.msk.bf16.vlgmr.msrb.gmra.mxu1 %vm278_vm0, %v408_v18 }
 0x19f   : > { %v645_v19 = vpop.eup %644 }
 0x1a0   : > { %v406_v20 = vmul.f32 %v645_v19, %v637_v60 }
 0x1a2   : > { %v410_v21 = vpack.c.bf16 %v406_v20, %v406_v20 }
 0x1a4   : > { %605 = vmatmul.msk.bf16.vlgmr.msrb.gmra.mxu3 %vm278_vm0, %v410_v21 }
 0x213   : > { %v427_v22 = vpop.f32.mrf.mxu0 }
 0x214   : > { %v488_v23 = vpack.c.bf16 %v427_v22, %v427_v22 }
 0x216   : > { %493 = vst.msk [vmem:[%s251_s6] sm:$0xf] %vm492_vm4, %v488_v23 }
 0x21b   : > { %v429_v24 = vpop.f32.mrf.mxu0  ;;  %v446_v25 = vpop.f32.mrf.mxu1 }
 0x21c   : > { %v489_v26 = vpack.c.bf16 %v446_v25, %v446_v25 }
 0x21e   : > { %494 = vst.msk [vmem:[%s251_s6 + $0x4] sm:$0xf] %vm492_vm4, %v489_v26 }
 0x21f   : > { %v465_v27 = vpop.f32.mrf.mxu2 }
 0x220   : > { %v490_v28 = vpack.c.bf16 %v465_v27, %v465_v27 }
 0x222   : > { %495 = vst.msk [vmem:[%s251_s6 + $0x8] sm:$0xf] %vm492_vm4, %v490_v28 }
 0x223   : > { %v448_v29 = vpop.f32.mrf.mxu1 }
 0x227   : > { %v467_v30 = vpop.f32.mrf.mxu2  ;;  %v484_v31 = vpop.f32.mrf.mxu3 }
 0x228   : > { %v491_v32 = vpack.c.bf16 %v484_v31, %v484_v31 }
 0x22a   : > { %496 = vst.msk [vmem:[%s251_s6 + $0xc] sm:$0xf] %vm492_vm4, %v491_v32 }
 0x22f   : > { %v486_v33 = vpop.f32.mrf.mxu3 }
 0x230 PF: > { %s14_s15 = sadd.s32 1, %s652_s15  }
 0x231   : > { %p11_p4 = scmp.ge.s32.totalorder %s14_s15, 4  }
 0x233   :  { %13 = sbr.rel (!%p11_p4) target bundleno = 1 (0x1), region = 75 }

// kernel: transformer_forward.36
= control target key start
LH: loop header
LB: loop body
LE: loop exit
PB: predicated region body
PF: predicated region fallthrough
CT: control target
= control target key end

     0   :  { %vm28_vm0 = vcmask 261120   ;;  %v216_v1 = vmov 0.0   ;;  %vm72_vm1 = vcmask 523264   ;;  %v217_v23 = vmov 32.0   ;;  %s299_s1 = inlined_call_operand.vmem [shape: bf16[64,32], index: 1, kind: input, shape index: {}]   ;;  %s300_s0 = inlined_call_operand.vmem [shape: bf16[16,64], index: 0, kind: input, shape index: {}]   ;;  %s301_s2 = inlined_call_operand.vmem [shape: f32[1,32], index: 2, kind: input, shape index: {}]   ;;  %s302_s3 = inlined_call_operand.vmem [shape: f32[16,32], index: 3, kind: input, shape index: {}]   ;;  %s303_s4 = inlined_call_operand.vmem [shape: f32[1,32], index: 4, kind: input, shape index: {}]   ;;  %s304_s5 = inlined_call_operand.vmem [shape: f32[1,32], index: 5, kind: input, shape index: {}]   ;;  %s305_s6 = inlined_call_operand.vmem [shape: f32[16,32], index: 6, kind: output, shape index: {}]  }
   0x1   :  { %v204_v0 = vld [vmem:[%s299_s1 + $0x18] sm:$0xff]  ;;  %29 = vst.msk [vmem:[#allocation2] sm:$0xff] %vm28_vm0, %v216_v1  ;;  %v203_v2 = vld [vmem:[%s299_s1 + $0x10] sm:$0xff]  ;;  %v202_v3 = vld [vmem:[%s299_s1 + $0x8] sm:$0xff]  ;;  %210 = vrcp.f32 %v217_v23 }
   0x2   :  { %30 = vst.msk [vmem:[#allocation2 + $0x8] sm:$0xff] %vm28_vm0, %v216_v1  ;;  %80 = vmatpush.bf16.msra.mxu0 %v204_v0  ;;  %v201_v4 = vld [vmem:[%s299_s1] sm:$0xff]  ;;  %v107_v19 = vld [vmem:[%s302_s3 + $0x8] sm:$0xff] }
   0x3   :  { %v200_v5 = vld [vmem:[%s300_s0] sm:$0xff] }
   0x4   :  { %v207_v10 = vld [vmem:[%s301_s2] ss:$0 sm:$0xff] }
   0x5   :  { %v106_v14 = vld [vmem:[%s302_s3] sm:$0xff] }
   0x6   :  { %81 = vmatpush.bf16.msra.mxu0 %v203_v2  ;;  %v208_v54 = vld [vmem:[%s303_s4] ss:$0 sm:$0xff] }
   0x7   :  { %v211_v24 = vpop.eup %210  ;;  %v209_v57 = vld [vmem:[%s304_s5] ss:$0 sm:$0xff] }
   0x8   :  { %v31_v6 = vld [vmem:[#allocation2] sm:$0xff]  ;;  %v117_v25 = vmul.f32 32.0, %v211_v24  ;;  %vm121_vm2 = vweird.f32 %v211_v24 }
   0x9   :  { %v32_v9 = vld [vmem:[#allocation2 + $0x8] sm:$0xff] }
   0xa   :  { %82 = vmatpush.bf16.msra.mxu0 %v202_v3  ;;  %v118_v26 = vsub.f32 1.0, %v117_v25 }
   0xc   :  { %v119_v27 = vmul.f32 %v211_v24, %v118_v26 }
   0xe   :  { %83 = vmatpush.bf16.msra.mxu0 %v201_v4  ;;  %v120_v28 = vadd.f32 %v211_v24, %v119_v27 }
  0x10   :  { %v122_v29 = vsel %vm121_vm2, %v211_v24, %v120_v28 }
  0x11   :  { %199 = vmatmul.msk.bf16.vlgmr.msra.gmra.mxu0 %vm72_vm1, %v200_v5 }
  0x8e   :  { %v85_v7 = vpop.f32.mrf.mxu0 }
  0x8f   :  { %v90_v8 = vadd.f32 %v85_v7, %v31_v6 }
  0x91   :  { %93 = vst.msk [vmem:[#allocation2] sm:$0xff] %vm28_vm0, %v90_v8 }
  0x96   :  { %v87_v11 = vpop.f32.mrf.mxu0 }
  0x97   :  { %v91_v12 = vadd.f32 %v87_v11, %v32_v9 }
  0x98   :  { %v98_v13 = vld [vmem:[#allocation2] sm:$0xff] }
  0x99   :  { %94 = vst.msk [vmem:[#allocation2 + $0x8] sm:$0xff] %vm28_vm0, %v91_v12  ;;  %v104_v15 = vadd.f32 %v207_v10, %v98_v13 }
  0x9b   :  { %v108_v16 = vadd.f32 %v106_v14, %v104_v15 }
  0x9d   :  { %v110_v17 = vsel %vm28_vm0, %v108_v16, 0.0 }
  0x9e   :  { %111 = vadd.xlane.f32.xlu0 %v110_v17 }
  0xa0   :  { %v99_v18 = vld [vmem:[#allocation2 + $0x8] sm:$0xff] }
  0xa1   :  { %v105_v20 = vadd.f32 %v207_v10, %v99_v18 }
  0xa3   :  { %v109_v21 = vadd.f32 %v107_v19, %v105_v20 }
  0xa5   :  { %v113_v22 = vsel %vm28_vm0, %v109_v21, 0.0 }
  0xa6   :  { %114 = vadd.xlane.f32.xlu0 %v113_v22 }
 0x111   :  { %v112_v30 = vpop.xlane.xlu0 %111 }
 0x112   :  { %v123_v31 = vmul.f32 %v122_v29, %v112_v30 }
 0x114   :  { %v125_v32 = vsub.f32 %v108_v16, %v123_v31 }
 0x116   :  { %v127_v33 = vmul.f32 %v125_v32, %v125_v32 }
 0x118   :  { %v129_v34 = vsel %vm28_vm0, %v127_v33, 0.0 }
 0x119   :  { %130 = vadd.xlane.f32.xlu1 %v129_v34  ;;  %v115_v35 = vpop.xlane.xlu0 %114 }
 0x11a   :  { %v124_v36 = vmul.f32 %v122_v29, %v115_v35 }
 0x11c   :  { %v126_v37 = vsub.f32 %v109_v21, %v124_v36 }
 0x11e   :  { %v128_v38 = vmul.f32 %v126_v37, %v126_v37 }
 0x120   :  { %v132_v39 = vsel %vm28_vm0, %v128_v38, 0.0 }
 0x121   :  { %133 = vadd.xlane.f32.xlu1 %v132_v39 }
 0x18c   :  { %v131_v40 = vpop.xlane.xlu1 %130 }
 0x18d   :  { %v135_v41 = vmul.f32 %v131_v40, %v122_v29 }
 0x18f   :  { %v137_v42 = vadd.f32 1e-06, %v135_v41 }
 0x191   :  { %212 = vrsqrt.f32 %v137_v42  ;;  %vm145_vm4 = vweird.f32 %v137_v42 }
 0x194   :  { %v134_v43 = vpop.xlane.xlu1 %133 }
 0x195   :  { %v136_v44 = vmul.f32 %v134_v43, %v122_v29 }
 0x197   :  { %v213_v45 = vpop.eup %212  ;;  %v138_v46 = vadd.f32 1e-06, %v136_v44 }
 0x198   :  { %v140_v47 = vmul.f32 %v213_v45, %v137_v42  ;;  %vm146_vm3 = vweird.f32 %v213_v45 }
 0x199   :  { %214 = vrsqrt.f32 %v138_v46  ;;  %vm147_vm5 = vmor %vm145_vm4, %vm146_vm3  ;;  %vm155_vm7 = vweird.f32 %v138_v46 }
 0x19a   :  { %v141_v48 = vmul.f32 %v213_v45, %v140_v47 }
 0x19c   :  { %v142_v49 = vmul.f32 0.5, %v141_v48 }
 0x19e   :  { %v143_v50 = vsub.f32 1.5, %v142_v49 }
 0x19f   :  { %v215_v51 = vpop.eup %214 }
 0x1a0   :  { %v144_v52 = vmul.f32 %v213_v45, %v143_v50  ;;  %v150_v53 = vmul.f32 %v215_v51, %v138_v46  ;;  %vm156_vm6 = vweird.f32 %v215_v51 }
 0x1a1   :  { %vm157_vm8 = vmor %vm155_vm7, %vm156_vm6 }
 0x1a2   :  { %v148_v55 = vsel %vm147_vm5, %v213_v45, %v144_v52  ;;  %v151_v56 = vmul.f32 %v215_v51, %v150_v53 }
 0x1a3   :  { %v159_v58 = vmul.f32 %v148_v55, %v125_v32 }
 0x1a4   :  { %v152_v59 = vmul.f32 0.5, %v151_v56 }
 0x1a5   :  { %v165_v60 = vmul.f32 %v208_v54, %v159_v58 }
 0x1a6   :  { %v153_v61 = vsub.f32 1.5, %v152_v59 }
 0x1a7   :  { %v171_v62 = vadd.f32 %v209_v57, %v165_v60 }
 0x1a8   :  { %v154_v63 = vmul.f32 %v215_v51, %v153_v61 }
 0x1a9   :  { %173 = vst.msk [vmem:[%s305_s6] sm:$0xff] %vm28_vm0, %v171_v62 }
 0x1aa   :  { %v158_v0 = vsel %vm157_vm8, %v215_v51, %v154_v63 }
 0x1ab   :  { %v160_v1 = vmul.f32 %v158_v0, %v126_v37 }
 0x1ad   :  { %v166_v2 = vmul.f32 %v208_v54, %v160_v1 }
 0x1af   :  { %v172_v3 = vadd.f32 %v209_v57, %v166_v2 }
 0x1b1   :  { %174 = vst.msk [vmem:[%s305_s6 + $0x8] sm:$0xff] %vm28_vm0, %v172_v3 }

// kernel: transformer_forward.47
= control target key start
LH: loop header
LB: loop body
LE: loop exit
PB: predicated region body
PF: predicated region fallthrough
CT: control target
= control target key end

     0   :  { %vm16_vm0 = vcmask 523264   ;;  %v98_v1 = vmov 0.0   ;;  %vm44_vm1 = vcmask 261120   ;;  %vm74_vm2 = vcmask 519168   ;;  %s133_s1 = inlined_call_operand.vmem [shape: bf16[32,64], index: 1, kind: input, shape index: {}]   ;;  %s134_s0 = inlined_call_operand.vmem [shape: bf16[16,32], index: 0, kind: input, shape index: {}]   ;;  %s135_s2 = inlined_call_operand.vmem [shape: bf16[16,64], index: 2, kind: output, shape index: {}]  }
   0x1   :  { %v96_v0 = vld [vmem:[%s133_s1 + $0x8] sm:$0xff]  ;;  %17 = vst.msk [vmem:[#allocation2] sm:$0xff] %vm16_vm0, %v98_v1  ;;  %v95_v2 = vld [vmem:[%s133_s1] sm:$0xff] }
   0x2   :  { %18 = vst.msk [vmem:[#allocation2 + $0x8] sm:$0xff] %vm16_vm0, %v98_v1  ;;  %54 = vmatpush.bf16.msra.mxu0 %v96_v0  ;;  %v94_v3 = vld [vmem:[%s134_s0] sm:$0xff] }
   0x6   :  { %55 = vmatpush.bf16.msra.mxu0 %v95_v2 }
   0x8   :  { %v19_v4 = vld [vmem:[#allocation2] sm:$0xff] }
   0x9   :  { %93 = vmatmul.msk.bf16.vlgmr.msra.gmra.mxu0 %vm44_vm1, %v94_v3  ;;  %v20_v7 = vld [vmem:[#allocation2 + $0x8] sm:$0xff] }
  0x86   :  { %v57_v5 = vpop.f32.mrf.mxu0 }
  0x87   :  { %v62_v6 = vadd.f32 %v57_v5, %v19_v4 }
  0x89   :  { %65 = vst.msk [vmem:[#allocation2] sm:$0xff] %vm16_vm0, %v62_v6 }
  0x8e   :  { %v59_v8 = vpop.f32.mrf.mxu0 }
  0x8f   :  { %v63_v9 = vadd.f32 %v59_v8, %v20_v7 }
  0x90   :  { %v70_v10 = vld [vmem:[#allocation2] sm:$0xff] }
  0x91   :  { %v72_v11 = vpack.c.bf16 %v70_v10, %v70_v10  ;;  %66 = vst.msk [vmem:[#allocation2 + $0x8] sm:$0xff] %vm16_vm0, %v63_v9 }
  0x93   :  { %75 = vst.msk [vmem:[%s135_s2] sm:$0xf] %vm74_vm2, %v72_v11 }
  0x98   :  { %v71_v12 = vld [vmem:[#allocation2 + $0x8] sm:$0xff] }
  0x99   :  { %v73_v13 = vpack.c.bf16 %v71_v12, %v71_v12 }
  0x9b   :  { %76 = vst.msk [vmem:[%s135_s2 + $0x4] sm:$0xf] %vm74_vm2, %v73_v13 }

// kernel: transformer_forward.61
= control target key start
LH: loop header
LB: loop body
LE: loop exit
PB: predicated region body
PF: predicated region fallthrough
CT: control target
= control target key end

     0   :  { %vm17_vm0 = vcmask 130048   ;;  %v141_v1 = vmov 0.0   ;;  %s178_s0 = inlined_call_operand.vmem [shape: bf16[16,32], index: 0, kind: input, shape index: {}]   ;;  %s179_s1 = inlined_call_operand.vmem [shape: bf16[32,16], index: 1, kind: input, shape index: {}]   ;;  %s180_s2 = inlined_call_operand.hbm [shape: f32[16,16], index: 2, kind: output, shape index: {}]  }
   0x1   :  { %v110_v0 = vld [vmem:[%s179_s1 + $0x8] sm:$0xff]  ;;  %18 = vst.msk [vmem:[#allocation2] sm:$0xff] %vm17_vm0, %v141_v1 }
   0x2   :  { %7 = vsyncpa [#allocation4], 0  ;;  %55 = vmatpush.bf16.msra.mxu0 %v110_v0  ;;  %v109_v2 = vld [vmem:[%s179_s1] sm:$0xff]  ;;  %19 = vst.msk [vmem:[#allocation2 + $0x8] sm:$0xff] %vm17_vm0, %v141_v1  ;;  %vm45_vm1 = vcmask 261120   ;;  %s142_s1 = smov [#allocation3]  }
   0x3   :  { %v108_v3 = vld [vmem:[%s178_s0] sm:$0xff]  ;;  %s81_s15 = sshll.u32 %s142_s1, 4  ;;  %s83_s17 = sshll.u32 %s180_s2, 4  ;;  %s82_s15 = int_to_ptr.vmem [resolvable:$true] %s81_s15  ;;  %s84_s17 = int_to_ptr.hbm [resolvable:$true] %s83_s17 }
   0x4   :  { %s143_s18 = smov 128   ;;  %s144_s19 = smov 8  }
   0x6   :  { %56 = vmatpush.bf16.msra.mxu0 %v109_v2 }
   0x8   :  { %v20_v4 = vld [vmem:[#allocation2] sm:$0xff] }
   0x9   :  { %107 = vmatmul.msk.bf16.vlgmr.msra.gmra.mxu0 %vm45_vm1, %v108_v3  ;;  %v21_v7 = vld [vmem:[#allocation2 + $0x8] sm:$0xff] }
  0x86   :  { %v58_v5 = vpop.f32.mrf.mxu0 }
  0x87   :  { %v63_v6 = vadd.f32 %v58_v5, %v20_v4 }
  0x89   :  { %66 = vst.msk [vmem:[#allocation2] sm:$0xff] %vm17_vm0, %v63_v6 }
  0x8e   :  { %v60_v8 = vpop.f32.mrf.mxu0 }
  0x8f   :  { %v64_v9 = vadd.f32 %v60_v8, %v21_v7 }
  0x90   :  { %v71_v10 = vld [vmem:[#allocation2] sm:$0xff] }
  0x91   :  { %67 = vst.msk [vmem:[#allocation2 + $0x8] sm:$0xff] %vm17_vm0, %v64_v9  ;;  %v73_v11 = vmul.f32 0.17677669, %v71_v10 }
  0x93   :  { %75 = vst.msk [vmem:[#allocation3] sm:$0xff] %vm17_vm0, %v73_v11 }
  0x98   :  { %v72_v12 = vld [vmem:[#allocation2 + $0x8] sm:$0xff] }
  0x99   :  { %v74_v13 = vmul.f32 0.17677669, %v72_v12 }
  0x9b   :  { %76 = vst.msk [vmem:[#allocation3 + $0x8] sm:$0xff] %vm17_vm0, %v74_v13 }
  0x9c   :  { %89 = dma.vmem_to_hbm [thread:$0]  %s82_s15, 256, %s84_s17, [#allocation4], %s143_s18, %s143_s18, %s144_s19  }
  0x9d   :  { %139 = dma.done.wait [#allocation4], 256  }
  0x9e   :  { %140 = vsyncadd [#allocation4], 4294967040 }
  0x9f   :  { %94 = vsyncpa [#allocation4], 1 }

</bundles_post_ra>
